<compile_context>
chip_gen: v5e
topology: v5e:2x2
jax: 0.10.0
libtpu: 0.0.40
codegen_flags: <defaults>
</compile_context>

<pallas_src>
import jax
import jax.numpy as jnp
from jax import lax
from jax.experimental import pallas as pl
from jax.experimental.pallas import tpu as pltpu

OUT_LANE_PAD = 128  # lane-dense output width for the regressor store


def _layer_norm(v, w, b, eps=1e-5):
    # Two-pass (centered) variance, matching PyTorch LayerNorm numerics.
    mean = jnp.mean(v, axis=-1, keepdims=True)
    c = v - mean
    var = jnp.mean(c * c, axis=-1, keepdims=True)
    return c * lax.rsqrt(var + eps) * w + b


def _make_kernel(num_heads, d_model):
    head_dim = d_model // num_heads

    def kernel(x_ref, wemb_ref, bemb_ref,
               wqkv_ref, bq_ref, wo_ref, bo_ref,
               w1_ref, b1_ref, w2_ref, b2_ref,
               ln1w_ref, ln1b_ref, ln2w_ref, ln2b_ref,
               wreg_ref, breg_ref, out_ref, h_ref):
        l = pl.program_id(0)
        last = pl.num_programs(0) - 1

        # ---- embedding (only on the first grid step) ----
        @pl.when(l == 0)
        def _():
            h_ref[...] = (jnp.dot(x_ref[...], wemb_ref[...],
                                  preferred_element_type=jnp.float32)
                          + bemb_ref[...])

        h = h_ref[...]

        # ---- MultiheadAttention: one packed QKV matmul per layer ----
        # 1/sqrt(head_dim) already folded into the Q slice of wqkv / bq;
        # K bias cancels in softmax; V bias folded into bo (offline).
        qkv = jnp.dot(h, wqkv_ref[...], preferred_element_type=jnp.float32)  # (S, 3D)
        q = qkv[:, 0 * d_model:1 * d_model] + bq_ref[...]
        k = qkv[:, 1 * d_model:2 * d_model]
        v = qkv[:, 2 * d_model:3 * d_model]

        head_outs = []
        for hd in range(num_heads):          # static unroll; slices stay within one vreg
            lo = hd * head_dim
            qh = q[:, lo:lo + head_dim]
            kh = k[:, lo:lo + head_dim]
            vh = v[:, lo:lo + head_dim]

            sc = lax.dot_general(            # (S, S), contract head_dim
                qh, kh, (((1,), (1,)), ((), ())),
                preferred_element_type=jnp.float32)
            sc = sc - jnp.max(sc, axis=-1, keepdims=True)
            p = jnp.exp(sc)
            # approximate EUP reciprocal (documented deviation from exact softmax)
            p = p * pl.reciprocal(jnp.sum(p, axis=-1, keepdims=True), approx=True)
            head_outs.append(jnp.dot(p, vh, preferred_element_type=jnp.float32))

        heads = jnp.concatenate(head_outs, axis=-1)                     # (S, D)
        attn = jnp.dot(heads, wo_ref[...],
                       preferred_element_type=jnp.float32) + bo_ref[...]

        # post-norm residual 1
        h = _layer_norm(h + attn, ln1w_ref[...], ln1b_ref[...])

        # ---- feed-forward (Linear -> ReLU -> Linear), bf16 weights, f32 accum ----
        ff = jnp.dot(h.astype(jnp.bfloat16), w1_ref[...],
                     preferred_element_type=jnp.float32)
        ff = jnp.maximum(ff + b1_ref[...], 0.0)
        ff = jnp.dot(ff.astype(jnp.bfloat16), w2_ref[...],
                     preferred_element_type=jnp.float32)
        ff = ff + b2_ref[...]

        # post-norm residual 2
        h = _layer_norm(h + ff, ln2w_ref[...], ln2b_ref[...])
        h_ref[...] = h

        # ---- regressor head (only on the last grid step), lane-padded dense store ----
        @pl.when(l == last)
        def _():
            out_ref[...] = (jnp.dot(h, wreg_ref[...],
                                    preferred_element_type=jnp.float32)
                            + breg_ref[...])

    return kernel


def prepare_params(raw, num_layers, num_heads, num_classes):
    """Convert 'torch-layout' (pre-transposed, (in,out)) weights into kernel slabs."""
    L = num_layers
    d_model = raw["wemb"].shape[1]
    head_dim = d_model // num_heads
    scale = 1.0 / (head_dim ** 0.5)

    in_w = raw["in_w"]                                   # (L, D, 3D)
    in_b = raw["in_b"]                                   # (L, 3D)

    # Fold 1/sqrt(head_dim) into the Q slice of the packed QKV weight + Q bias.
    wqkv = jnp.concatenate([in_w[:, :, :d_model] * scale,
                            in_w[:, :, d_model:]], axis=-1)          # (L, D, 3D)
    bq = (in_b[:, :d_model] * scale).reshape(L, 1, d_model)

    # K bias cancels in softmax; fold V bias through the output projection:
    # bo' = bo + bv @ Wo  (softmax rows sum to 1).
    bv = in_b[:, 2 * d_model:]                                        # (L, D)
    bo = raw["out_b"] + jnp.einsum("ld,lde->le", bv, raw["out_w"])
    bo = bo.reshape(L, 1, d_model)

    wreg_p = jnp.zeros((d_model, OUT_LANE_PAD), jnp.float32).at[:, :num_classes].set(raw["wreg"])
    breg_p = jnp.zeros((1, OUT_LANE_PAD), jnp.float32).at[:, :num_classes].set(raw["breg"])

    return {
        "wemb": raw["wemb"], "bemb": raw["bemb"],
        "wqkv": wqkv, "bq": bq,
        "wo": raw["out_w"], "bo": bo,
        "w1": raw["w1"].astype(jnp.bfloat16), "b1": raw["b1"].reshape(L, 1, -1),
        "w2": raw["w2"].astype(jnp.bfloat16), "b2": raw["b2"].reshape(L, 1, -1),
        "ln1w": raw["ln1w"].reshape(L, 1, -1), "ln1b": raw["ln1b"].reshape(L, 1, -1),
        "ln2w": raw["ln2w"].reshape(L, 1, -1), "ln2b": raw["ln2b"].reshape(L, 1, -1),
        "wreg": wreg_p, "breg": breg_p,
    }


def transformer_regressor_forward(x, params, num_layers, num_heads, num_classes):
    S = x.shape[0]
    d_model = params["wemb"].shape[1]

    def const_spec(arr):
        # Same block every layer iteration (Pallas keeps it resident / skips re-DMA).
        shape = arr.shape
        return pl.BlockSpec(shape, lambda l, _s=shape: (0,) * len(_s))

    def layer_spec(arr):
        # Leading layer axis squeezed; per-layer slab streamed behind the grid axis
        # so layer l+1 weight DMA overlaps layer l compute.
        shape = arr.shape
        return pl.BlockSpec((None,) + shape[1:], lambda l: (l, 0, 0))

    args = (x, params["wemb"], params["bemb"],
            params["wqkv"], params["bq"], params["wo"], params["bo"],
            params["w1"], params["b1"], params["w2"], params["b2"],
            params["ln1w"], params["ln1b"], params["ln2w"], params["ln2b"],
            params["wreg"], params["breg"])

    in_specs = [
        const_spec(x),
        const_spec(params["wemb"]), const_spec(params["bemb"]),
        layer_spec(params["wqkv"]), layer_spec(params["bq"]),
        layer_spec(params["wo"]), layer_spec(params["bo"]),
        layer_spec(params["w1"]), layer_spec(params["b1"]),
        layer_spec(params["w2"]), layer_spec(params["b2"]),
        layer_spec(params["ln1w"]), layer_spec(params["ln1b"]),
        layer_spec(params["ln2w"]), layer_spec(params["ln2b"]),
        const_spec(params["wreg"]), const_spec(params["breg"]),
    ]

    kernel = _make_kernel(num_heads, d_model)
    out_padded = pl.pallas_call(
        kernel,
        out_shape=jax.ShapeDtypeStruct((S, OUT_LANE_PAD), jnp.float32),
        grid_spec=pltpu.PrefetchScalarGridSpec(
            num_scalar_prefetch=0,
            grid=(num_layers,),
            in_specs=in_specs,
            out_specs=pl.BlockSpec((S, OUT_LANE_PAD), lambda l: (0, 0)),
            scratch_shapes=[pltpu.VMEM((S, d_model), jnp.float32)],  # carried h
        ),
        compiler_params=pltpu.CompilerParams(
            dimension_semantics=("arbitrary",)),       # sequential layer carry
    )(*args)
    return out_padded[:, :num_classes]


def reference_forward(x, raw, num_layers, num_heads):
    """Pure-JAX reference of the same forward pass (FFN weights bf16 to match kernel —
    intentional tolerance decision vs the fp32 PyTorch module)."""
    d_model = raw["wemb"].shape[1]
    head_dim = d_model // num_heads
    w1 = raw["w1"].astype(jnp.bfloat16)
    w2 = raw["w2"].astype(jnp.bfloat16)
    h = x @ raw["wemb"] + raw["bemb"]
    for l in range(num_layers):
        qkv = h @ raw["in_w"][l] + raw["in_b"][l]
        q, k, v = jnp.split(qkv, 3, axis=-1)
        heads = []
        for hd in range(num_heads):
            lo = hd * head_dim
            qh = q[:, lo:lo + head_dim] / jnp.sqrt(jnp.float32(head_dim))
            sc = qh @ k[:, lo:lo + head_dim].T
            p = jax.nn.softmax(sc, axis=-1)
            heads.append(p @ v[:, lo:lo + head_dim])
        attn = jnp.concatenate(heads, -1) @ raw["out_w"][l] + raw["out_b"][l]
        h = _layer_norm(h + attn, raw["ln1w"][l], raw["ln1b"][l])
        ff = jnp.dot(h.astype(jnp.bfloat16), w1[l],
                     preferred_element_type=jnp.float32) + raw["b1"][l]
        ff = jnp.maximum(ff, 0.0)
        ff = jnp.dot(ff.astype(jnp.bfloat16), w2[l],
                     preferred_element_type=jnp.float32) + raw["b2"][l]
        h = _layer_norm(h + ff, raw["ln2w"][l], raw["ln2b"][l])
    return h @ raw["wreg"] + raw["breg"]


if __name__ == "__main__":
    # Small shapes consistent with the module's forward.
    input_dim, d_model, num_heads, num_layers, num_classes = 16, 32, 4, 2, 3
    dim_ff = 2048          # nn.TransformerEncoderLayer default dim_feedforward
    batch = 8              # becomes the sequence length inside the encoder

    key = jax.random.PRNGKey(0)
    keys = jax.random.split(key, 16)

    def uinit(k, shape, fan_in):
        bound = 1.0 / (fan_in ** 0.5)
        return jax.random.uniform(k, shape, jnp.float32, -bound, bound)

    # "Raw" weights stored pre-transposed as (in_features, out_features).
    raw = {
        "wemb": uinit(keys[0], (input_dim, d_model), input_dim),
        "bemb": uinit(keys[1], (1, d_model), input_dim),
        "in_w": uinit(keys[2], (num_layers, d_model, 3 * d_model), d_model),
        "in_b": uinit(keys[3], (num_layers, 3 * d_model), d_model),
        "out_w": uinit(keys[4], (num_layers, d_model, d_model), d_model),
        "out_b": uinit(keys[5], (num_layers, d_model), d_model),
        "w1": uinit(keys[6], (num_layers, d_model, dim_ff), d_model),
        "b1": uinit(keys[7], (num_layers, dim_ff), d_model),
        "w2": uinit(keys[8], (num_layers, dim_ff, d_model), dim_ff),
        "b2": uinit(keys[9], (num_layers, d_model), dim_ff),
        "ln1w": jnp.ones((num_layers, d_model), jnp.float32),   # PyTorch LN default init
        "ln1b": jnp.zeros((num_layers, d_model), jnp.float32),
        "ln2w": jnp.ones((num_layers, d_model), jnp.float32),
        "ln2b": jnp.zeros((num_layers, d_model), jnp.float32),
        "wreg": uinit(keys[10], (d_model, num_classes), d_model),
        "breg": uinit(keys[11], (1, num_classes), d_model),
    }

    x = jax.random.normal(keys[12], (batch, input_dim), jnp.float32)

    params = prepare_params(raw, num_layers, num_heads, num_classes)
    out = transformer_regressor_forward(x, params, num_layers, num_heads, num_classes)
    out = jax.block_until_ready(out)

    ref = reference_forward(x, raw, num_layers, num_heads)
    assert out.shape == (batch, num_classes)
    assert jnp.allclose(out, ref, atol=1e-2, rtol=1e-2), \
        "Pallas output mismatch vs JAX reference"
    print("KERNEL_OK")
</pallas_src>

<mosaic_0001>
module attributes {stable_mosaic.version = 11 : i64} {
  func.func @kernel(%arg0: i32, %arg1: memref<8x16xf32, #tpu.memory_space<vmem>>, %arg2: memref<16x32xf32, #tpu.memory_space<vmem>>, %arg3: memref<1x32xf32, #tpu.memory_space<vmem>>, %arg4: memref<1x32x96xf32, #tpu.memory_space<vmem>>, %arg5: memref<1x1x32xf32, #tpu.memory_space<vmem>>, %arg6: memref<1x32x32xf32, #tpu.memory_space<vmem>>, %arg7: memref<1x1x32xf32, #tpu.memory_space<vmem>>, %arg8: memref<1x32x2048xbf16, #tpu.memory_space<vmem>>, %arg9: memref<1x1x2048xf32, #tpu.memory_space<vmem>>, %arg10: memref<1x2048x32xbf16, #tpu.memory_space<vmem>>, %arg11: memref<1x1x32xf32, #tpu.memory_space<vmem>>, %arg12: memref<1x1x32xf32, #tpu.memory_space<vmem>>, %arg13: memref<1x1x32xf32, #tpu.memory_space<vmem>>, %arg14: memref<1x1x32xf32, #tpu.memory_space<vmem>>, %arg15: memref<1x1x32xf32, #tpu.memory_space<vmem>>, %arg16: memref<32x128xf32, #tpu.memory_space<vmem>>, %arg17: memref<1x128xf32, #tpu.memory_space<vmem>>, %arg18: memref<8x128xf32, #tpu.memory_space<vmem>>, %arg19: memref<8x32xf32, #tpu.memory_space<vmem>>) attributes {dimension_semantics = [#tpu.dimension_semantics<arbitrary>], iteration_bounds = array<i64: 2>, scalar_prefetch = 0 : i64, scratch_operands = 1 : i64, tpu.core_type = #tpu.core_type<tc>, window_params = [{pipeline_mode = #tpu.pipeline_mode<synchronous>, transform_indices = @transform_0, window_bounds = array<i64: 8, 16>}, {pipeline_mode = #tpu.pipeline_mode<synchronous>, transform_indices = @transform_1, window_bounds = array<i64: 16, 32>}, {pipeline_mode = #tpu.pipeline_mode<synchronous>, transform_indices = @transform_2, window_bounds = array<i64: 1, 32>}, {transform_indices = @transform_3, window_bounds = array<i64: 1, 32, 96>}, {transform_indices = @transform_4, window_bounds = array<i64: 1, 1, 32>}, {transform_indices = @transform_5, window_bounds = array<i64: 1, 32, 32>}, {transform_indices = @transform_6, window_bounds = array<i64: 1, 1, 32>}, {transform_indices = @transform_7, window_bounds = array<i64: 1, 32, 2048>}, {transform_indices = @transform_8, window_bounds = array<i64: 1, 1, 2048>}, {transform_indices = @transform_9, window_bounds = array<i64: 1, 2048, 32>}, {transform_indices = @transform_10, window_bounds = array<i64: 1, 1, 32>}, {transform_indices = @transform_11, window_bounds = array<i64: 1, 1, 32>}, {transform_indices = @transform_12, window_bounds = array<i64: 1, 1, 32>}, {transform_indices = @transform_13, window_bounds = array<i64: 1, 1, 32>}, {transform_indices = @transform_14, window_bounds = array<i64: 1, 1, 32>}, {pipeline_mode = #tpu.pipeline_mode<synchronous>, transform_indices = @transform_15, window_bounds = array<i64: 32, 128>}, {pipeline_mode = #tpu.pipeline_mode<synchronous>, transform_indices = @transform_16, window_bounds = array<i64: 1, 128>}, {pipeline_mode = #tpu.pipeline_mode<synchronous>, transform_indices = @transform_17, window_bounds = array<i64: 8, 128>}]} {
    %c0_i32 = arith.constant 0 : i32
    %0 = arith.cmpi eq, %arg0, %c0_i32 : i32
    %1 = arith.extui %0 : i1 to i32
    %c0_i32_0 = arith.constant 0 : i32
    %2 = arith.cmpi ne, %1, %c0_i32_0 : i32
    scf.if %2 {
      %c0_71 = arith.constant 0 : index
      %c0_72 = arith.constant 0 : index
      %154 = vector.load %arg1[%c0_71, %c0_72] : memref<8x16xf32, #tpu.memory_space<vmem>>, vector<8x16xf32>
      %c0_73 = arith.constant 0 : index
      %c0_74 = arith.constant 0 : index
      %155 = vector.load %arg2[%c0_73, %c0_74] : memref<16x32xf32, #tpu.memory_space<vmem>>, vector<16x32xf32>
      %cst_75 = arith.constant dense<0.000000e+00> : vector<8x32xf32>
      %156 = tpu.matmul %154, %155, %cst_75 {dimension_numbers = #tpu.dot_dimension_numbers<[1], [0], [0], [1], [0, 0, 1, 1], [], []>} : vector<8x16xf32>, vector<16x32xf32>, vector<8x32xf32> -> vector<8x32xf32>
      %c0_76 = arith.constant 0 : index
      %c0_77 = arith.constant 0 : index
      %157 = vector.load %arg3[%c0_76, %c0_77] : memref<1x32xf32, #tpu.memory_space<vmem>>, vector<1x32xf32>
      %158 = vector.broadcast %157 : vector<1x32xf32> to vector<8x32xf32>
      %159 = arith.addf %156, %158 : vector<8x32xf32>
      %c0_78 = arith.constant 0 : index
      %c0_79 = arith.constant 0 : index
      %160 = vector.load %arg19[%c0_78, %c0_79] : memref<8x32xf32, #tpu.memory_space<vmem>>, vector<8x32xf32>
      tpu.vector_store %arg19[%c0_78, %c0_79], %159 {strides = array<i32>} : memref<8x32xf32, #tpu.memory_space<vmem>>, vector<8x32xf32>,
    } else {
    }
    %c0 = arith.constant 0 : index
    %c0_1 = arith.constant 0 : index
    %3 = vector.load %arg19[%c0, %c0_1] : memref<8x32xf32, #tpu.memory_space<vmem>>, vector<8x32xf32>
    %c0_2 = arith.constant 0 : index
    %c0_3 = arith.constant 0 : index
    %c0_4 = arith.constant 0 : index
    %4 = vector.load %arg4[%c0_2, %c0_3, %c0_4] : memref<1x32x96xf32, #tpu.memory_space<vmem>>, vector<1x32x96xf32>
    %5 = vector.shape_cast %4 : vector<1x32x96xf32> to vector<32x96xf32>
    %cst = arith.constant dense<0.000000e+00> : vector<8x96xf32>
    %6 = tpu.matmul %3, %5, %cst {dimension_numbers = #tpu.dot_dimension_numbers<[1], [0], [0], [1], [0, 0, 1, 1], [], []>} : vector<8x32xf32>, vector<32x96xf32>, vector<8x96xf32> -> vector<8x96xf32>
    %7 = vector.extract_strided_slice %6 {offsets = [0, 0], sizes = [8, 32], strides = [1, 1]} : vector<8x96xf32> to vector<8x32xf32>
    %c0_5 = arith.constant 0 : index
    %c0_6 = arith.constant 0 : index
    %c0_7 = arith.constant 0 : index
    %8 = vector.load %arg5[%c0_5, %c0_6, %c0_7] : memref<1x1x32xf32, #tpu.memory_space<vmem>>, vector<1x1x32xf32>
    %9 = vector.shape_cast %8 : vector<1x1x32xf32> to vector<1x32xf32>
    %10 = vector.broadcast %9 : vector<1x32xf32> to vector<8x32xf32>
    %11 = arith.addf %7, %10 : vector<8x32xf32>
    %12 = vector.extract_strided_slice %6 {offsets = [0, 32], sizes = [8, 32], strides = [1, 1]} : vector<8x96xf32> to vector<8x32xf32>
    %13 = vector.extract_strided_slice %6 {offsets = [0, 64], sizes = [8, 32], strides = [1, 1]} : vector<8x96xf32> to vector<8x32xf32>
    %14 = vector.extract_strided_slice %11 {offsets = [0, 0], sizes = [8, 8], strides = [1, 1]} : vector<8x32xf32> to vector<8x8xf32>
    %15 = vector.extract_strided_slice %12 {offsets = [0, 0], sizes = [8, 8], strides = [1, 1]} : vector<8x32xf32> to vector<8x8xf32>
    %16 = vector.extract_strided_slice %13 {offsets = [0, 0], sizes = [8, 8], strides = [1, 1]} : vector<8x32xf32> to vector<8x8xf32>
    %cst_8 = arith.constant dense<0.000000e+00> : vector<8x8xf32>
    %17 = tpu.matmul %14, %15, %cst_8 {dimension_numbers = #tpu.dot_dimension_numbers<[1], [1], [0], [0], [0, 0, 1, 0], [], []>} : vector<8x8xf32>, vector<8x8xf32>, vector<8x8xf32> -> vector<8x8xf32>
    %cst_9 = arith.constant dense<0xFF800000> : vector<8xf32>
    %18 = vector.multi_reduction <maximumf>, %17, %cst_9 [1] : vector<8x8xf32> to vector<8xf32>
    %19 = vector.shape_cast %18 : vector<8xf32> to vector<8x1xf32>
    %20 = vector.broadcast %19 : vector<8x1xf32> to vector<8x8xf32>
    %21 = arith.subf %17, %20 : vector<8x8xf32>
    %22 = math.exp %21 : vector<8x8xf32>
    %cst_10 = arith.constant dense<0.000000e+00> : vector<8xf32>
    %23 = vector.multi_reduction <add>, %22, %cst_10 [1] : vector<8x8xf32> to vector<8xf32>
    %24 = vector.shape_cast %23 : vector<8xf32> to vector<8x1xf32>
    %25 = tpu.reciprocal %24 {approx = true} : vector<8x1xf32> -> vector<8x1xf32>
    %26 = vector.broadcast %25 : vector<8x1xf32> to vector<8x8xf32>
    %27 = arith.mulf %22, %26 : vector<8x8xf32>
    %cst_11 = arith.constant dense<0.000000e+00> : vector<8x8xf32>
    %28 = tpu.matmul %27, %16, %cst_11 {dimension_numbers = #tpu.dot_dimension_numbers<[1], [0], [0], [1], [0, 0, 1, 1], [], []>} : vector<8x8xf32>, vector<8x8xf32>, vector<8x8xf32> -> vector<8x8xf32>
    %29 = vector.extract_strided_slice %11 {offsets = [0, 8], sizes = [8, 8], strides = [1, 1]} : vector<8x32xf32> to vector<8x8xf32>
    %30 = vector.extract_strided_slice %12 {offsets = [0, 8], sizes = [8, 8], strides = [1, 1]} : vector<8x32xf32> to vector<8x8xf32>
    %31 = vector.extract_strided_slice %13 {offsets = [0, 8], sizes = [8, 8], strides = [1, 1]} : vector<8x32xf32> to vector<8x8xf32>
    %cst_12 = arith.constant dense<0.000000e+00> : vector<8x8xf32>
    %32 = tpu.matmul %29, %30, %cst_12 {dimension_numbers = #tpu.dot_dimension_numbers<[1], [1], [0], [0], [0, 0, 1, 0], [], []>} : vector<8x8xf32>, vector<8x8xf32>, vector<8x8xf32> -> vector<8x8xf32>
    %cst_13 = arith.constant dense<0xFF800000> : vector<8xf32>
    %33 = vector.multi_reduction <maximumf>, %32, %cst_13 [1] : vector<8x8xf32> to vector<8xf32>
    %34 = vector.shape_cast %33 : vector<8xf32> to vector<8x1xf32>
    %35 = vector.broadcast %34 : vector<8x1xf32> to vector<8x8xf32>
    %36 = arith.subf %32, %35 : vector<8x8xf32>
    %37 = math.exp %36 : vector<8x8xf32>
    %cst_14 = arith.constant dense<0.000000e+00> : vector<8xf32>
    %38 = vector.multi_reduction <add>, %37, %cst_14 [1] : vector<8x8xf32> to vector<8xf32>
    %39 = vector.shape_cast %38 : vector<8xf32> to vector<8x1xf32>
    %40 = tpu.reciprocal %39 {approx = true} : vector<8x1xf32> -> vector<8x1xf32>
    %41 = vector.broadcast %40 : vector<8x1xf32> to vector<8x8xf32>
    %42 = arith.mulf %37, %41 : vector<8x8xf32>
    %cst_15 = arith.constant dense<0.000000e+00> : vector<8x8xf32>
    %43 = tpu.matmul %42, %31, %cst_15 {dimension_numbers = #tpu.dot_dimension_numbers<[1], [0], [0], [1], [0, 0, 1, 1], [], []>} : vector<8x8xf32>, vector<8x8xf32>, vector<8x8xf32> -> vector<8x8xf32>
    %44 = vector.extract_strided_slice %11 {offsets = [0, 16], sizes = [8, 8], strides = [1, 1]} : vector<8x32xf32> to vector<8x8xf32>
    %45 = vector.extract_strided_slice %12 {offsets = [0, 16], sizes = [8, 8], strides = [1, 1]} : vector<8x32xf32> to vector<8x8xf32>
    %46 = vector.extract_strided_slice %13 {offsets = [0, 16], sizes = [8, 8], strides = [1, 1]} : vector<8x32xf32> to vector<8x8xf32>
    %cst_16 = arith.constant dense<0.000000e+00> : vector<8x8xf32>
    %47 = tpu.matmul %44, %45, %cst_16 {dimension_numbers = #tpu.dot_dimension_numbers<[1], [1], [0], [0], [0, 0, 1, 0], [], []>} : vector<8x8xf32>, vector<8x8xf32>, vector<8x8xf32> -> vector<8x8xf32>
    %cst_17 = arith.constant dense<0xFF800000> : vector<8xf32>
    %48 = vector.multi_reduction <maximumf>, %47, %cst_17 [1] : vector<8x8xf32> to vector<8xf32>
    %49 = vector.shape_cast %48 : vector<8xf32> to vector<8x1xf32>
    %50 = vector.broadcast %49 : vector<8x1xf32> to vector<8x8xf32>
    %51 = arith.subf %47, %50 : vector<8x8xf32>
    %52 = math.exp %51 : vector<8x8xf32>
    %cst_18 = arith.constant dense<0.000000e+00> : vector<8xf32>
    %53 = vector.multi_reduction <add>, %52, %cst_18 [1] : vector<8x8xf32> to vector<8xf32>
    %54 = vector.shape_cast %53 : vector<8xf32> to vector<8x1xf32>
    %55 = tpu.reciprocal %54 {approx = true} : vector<8x1xf32> -> vector<8x1xf32>
    %56 = vector.broadcast %55 : vector<8x1xf32> to vector<8x8xf32>
    %57 = arith.mulf %52, %56 : vector<8x8xf32>
    %cst_19 = arith.constant dense<0.000000e+00> : vector<8x8xf32>
    %58 = tpu.matmul %57, %46, %cst_19 {dimension_numbers = #tpu.dot_dimension_numbers<[1], [0], [0], [1], [0, 0, 1, 1], [], []>} : vector<8x8xf32>, vector<8x8xf32>, vector<8x8xf32> -> vector<8x8xf32>
    %59 = vector.extract_strided_slice %11 {offsets = [0, 24], sizes = [8, 8], strides = [1, 1]} : vector<8x32xf32> to vector<8x8xf32>
    %60 = vector.extract_strided_slice %12 {offsets = [0, 24], sizes = [8, 8], strides = [1, 1]} : vector<8x32xf32> to vector<8x8xf32>
    %61 = vector.extract_strided_slice %13 {offsets = [0, 24], sizes = [8, 8], strides = [1, 1]} : vector<8x32xf32> to vector<8x8xf32>
    %cst_20 = arith.constant dense<0.000000e+00> : vector<8x8xf32>
    %62 = tpu.matmul %59, %60, %cst_20 {dimension_numbers = #tpu.dot_dimension_numbers<[1], [1], [0], [0], [0, 0, 1, 0], [], []>} : vector<8x8xf32>, vector<8x8xf32>, vector<8x8xf32> -> vector<8x8xf32>
    %cst_21 = arith.constant dense<0xFF800000> : vector<8xf32>
    %63 = vector.multi_reduction <maximumf>, %62, %cst_21 [1] : vector<8x8xf32> to vector<8xf32>
    %64 = vector.shape_cast %63 : vector<8xf32> to vector<8x1xf32>
    %65 = vector.broadcast %64 : vector<8x1xf32> to vector<8x8xf32>
    %66 = arith.subf %62, %65 : vector<8x8xf32>
    %67 = math.exp %66 : vector<8x8xf32>
    %cst_22 = arith.constant dense<0.000000e+00> : vector<8xf32>
    %68 = vector.multi_reduction <add>, %67, %cst_22 [1] : vector<8x8xf32> to vector<8xf32>
    %69 = vector.shape_cast %68 : vector<8xf32> to vector<8x1xf32>
    %70 = tpu.reciprocal %69 {approx = true} : vector<8x1xf32> -> vector<8x1xf32>
    %71 = vector.broadcast %70 : vector<8x1xf32> to vector<8x8xf32>
    %72 = arith.mulf %67, %71 : vector<8x8xf32>
    %cst_23 = arith.constant dense<0.000000e+00> : vector<8x8xf32>
    %73 = tpu.matmul %72, %61, %cst_23 {dimension_numbers = #tpu.dot_dimension_numbers<[1], [0], [0], [1], [0, 0, 1, 1], [], []>} : vector<8x8xf32>, vector<8x8xf32>, vector<8x8xf32> -> vector<8x8xf32>
    %74 = tpu.concatenate %28, %43, %58, %73 in 1 : vector<8x8xf32>, vector<8x8xf32>, vector<8x8xf32>, vector<8x8xf32> -> vector<8x32xf32>
    %c0_24 = arith.constant 0 : index
    %c0_25 = arith.constant 0 : index
    %c0_26 = arith.constant 0 : index
    %75 = vector.load %arg6[%c0_24, %c0_25, %c0_26] : memref<1x32x32xf32, #tpu.memory_space<vmem>>, vector<1x32x32xf32>
    %76 = vector.shape_cast %75 : vector<1x32x32xf32> to vector<32x32xf32>
    %cst_27 = arith.constant dense<0.000000e+00> : vector<8x32xf32>
    %77 = tpu.matmul %74, %76, %cst_27 {dimension_numbers = #tpu.dot_dimension_numbers<[1], [0], [0], [1], [0, 0, 1, 1], [], []>} : vector<8x32xf32>, vector<32x32xf32>, vector<8x32xf32> -> vector<8x32xf32>
    %c0_28 = arith.constant 0 : index
    %c0_29 = arith.constant 0 : index
    %c0_30 = arith.constant 0 : index
    %78 = vector.load %arg7[%c0_28, %c0_29, %c0_30] : memref<1x1x32xf32, #tpu.memory_space<vmem>>, vector<1x1x32xf32>
    %79 = vector.shape_cast %78 : vector<1x1x32xf32> to vector<1x32xf32>
    %80 = vector.broadcast %79 : vector<1x32xf32> to vector<8x32xf32>
    %81 = arith.addf %77, %80 : vector<8x32xf32>
    %82 = arith.addf %3, %81 : vector<8x32xf32>
    %c0_31 = arith.constant 0 : index
    %c0_32 = arith.constant 0 : index
    %c0_33 = arith.constant 0 : index
    %83 = vector.load %arg12[%c0_31, %c0_32, %c0_33] : memref<1x1x32xf32, #tpu.memory_space<vmem>>, vector<1x1x32xf32>
    %84 = vector.shape_cast %83 : vector<1x1x32xf32> to vector<1x32xf32>
    %c0_34 = arith.constant 0 : index
    %c0_35 = arith.constant 0 : index
    %c0_36 = arith.constant 0 : index
    %85 = vector.load %arg13[%c0_34, %c0_35, %c0_36] : memref<1x1x32xf32, #tpu.memory_space<vmem>>, vector<1x1x32xf32>
    %86 = vector.shape_cast %85 : vector<1x1x32xf32> to vector<1x32xf32>
    %cst_37 = arith.constant dense<0.000000e+00> : vector<8xf32>
    %87 = vector.multi_reduction <add>, %82, %cst_37 [1] : vector<8x32xf32> to vector<8xf32>
    %88 = vector.shape_cast %87 : vector<8xf32> to vector<8x1xf32>
    %cst_38 = arith.constant 3.200000e+01 : f32
    %89 = vector.broadcast %cst_38 : f32 to vector<8x1xf32>
    %90 = arith.divf %88, %89 : vector<8x1xf32>
    %91 = vector.broadcast %90 : vector<8x1xf32> to vector<8x32xf32>
    %92 = arith.subf %82, %91 : vector<8x32xf32>
    %93 = arith.mulf %92, %92 : vector<8x32xf32>
    %cst_39 = arith.constant dense<0.000000e+00> : vector<8xf32>
    %94 = vector.multi_reduction <add>, %93, %cst_39 [1] : vector<8x32xf32> to vector<8xf32>
    %95 = vector.shape_cast %94 : vector<8xf32> to vector<8x1xf32>
    %cst_40 = arith.constant 3.200000e+01 : f32
    %96 = vector.broadcast %cst_40 : f32 to vector<8x1xf32>
    %97 = arith.divf %95, %96 : vector<8x1xf32>
    %cst_41 = arith.constant 9.99999974E-6 : f32
    %98 = vector.broadcast %cst_41 : f32 to vector<8x1xf32>
    %99 = arith.addf %97, %98 : vector<8x1xf32>
    %100 = math.rsqrt %99 : vector<8x1xf32>
    %101 = vector.broadcast %100 : vector<8x1xf32> to vector<8x32xf32>
    %102 = arith.mulf %92, %101 : vector<8x32xf32>
    %103 = vector.broadcast %84 : vector<1x32xf32> to vector<8x32xf32>
    %104 = arith.mulf %102, %103 : vector<8x32xf32>
    %105 = vector.broadcast %86 : vector<1x32xf32> to vector<8x32xf32>
    %106 = arith.addf %104, %105 : vector<8x32xf32>
    %107 = arith.truncf %106 : vector<8x32xf32> to vector<8x32xbf16>
    %c0_42 = arith.constant 0 : index
    %c0_43 = arith.constant 0 : index
    %c0_44 = arith.constant 0 : index
    %108 = vector.load %arg8[%c0_42, %c0_43, %c0_44] : memref<1x32x2048xbf16, #tpu.memory_space<vmem>>, vector<1x32x2048xbf16>
    %109 = vector.shape_cast %108 : vector<1x32x2048xbf16> to vector<32x2048xbf16>
    %cst_45 = arith.constant dense<0.000000e+00> : vector<8x2048xf32>
    %110 = tpu.matmul %107, %109, %cst_45 {dimension_numbers = #tpu.dot_dimension_numbers<[1], [0], [0], [1], [0, 0, 1, 1], [], []>} : vector<8x32xbf16>, vector<32x2048xbf16>, vector<8x2048xf32> -> vector<8x2048xf32>
    %c0_46 = arith.constant 0 : index
    %c0_47 = arith.constant 0 : index
    %c0_48 = arith.constant 0 : index
    %111 = vector.load %arg9[%c0_46, %c0_47, %c0_48] : memref<1x1x2048xf32, #tpu.memory_space<vmem>>, vector<1x1x2048xf32>
    %112 = vector.shape_cast %111 : vector<1x1x2048xf32> to vector<1x2048xf32>
    %113 = vector.broadcast %112 : vector<1x2048xf32> to vector<8x2048xf32>
    %114 = arith.addf %110, %113 : vector<8x2048xf32>
    %cst_49 = arith.constant 0.000000e+00 : f32
    %115 = vector.broadcast %cst_49 : f32 to vector<8x2048xf32>
    %116 = arith.maximumf %114, %115 : vector<8x2048xf32>
    %117 = arith.truncf %116 : vector<8x2048xf32> to vector<8x2048xbf16>
    %c0_50 = arith.constant 0 : index
    %c0_51 = arith.constant 0 : index
    %c0_52 = arith.constant 0 : index
    %118 = vector.load %arg10[%c0_50, %c0_51, %c0_52] : memref<1x2048x32xbf16, #tpu.memory_space<vmem>>, vector<1x2048x32xbf16>
    %119 = vector.shape_cast %118 : vector<1x2048x32xbf16> to vector<2048x32xbf16>
    %cst_53 = arith.constant dense<0.000000e+00> : vector<8x32xf32>
    %120 = tpu.matmul %117, %119, %cst_53 {dimension_numbers = #tpu.dot_dimension_numbers<[1], [0], [0], [1], [0, 0, 1, 1], [], []>} : vector<8x2048xbf16>, vector<2048x32xbf16>, vector<8x32xf32> -> vector<8x32xf32>
    %c0_54 = arith.constant 0 : index
    %c0_55 = arith.constant 0 : index
    %c0_56 = arith.constant 0 : index
    %121 = vector.load %arg11[%c0_54, %c0_55, %c0_56] : memref<1x1x32xf32, #tpu.memory_space<vmem>>, vector<1x1x32xf32>
    %122 = vector.shape_cast %121 : vector<1x1x32xf32> to vector<1x32xf32>
    %123 = vector.broadcast %122 : vector<1x32xf32> to vector<8x32xf32>
    %124 = arith.addf %120, %123 : vector<8x32xf32>
    %125 = arith.addf %106, %124 : vector<8x32xf32>
    %c0_57 = arith.constant 0 : index
    %c0_58 = arith.constant 0 : index
    %c0_59 = arith.constant 0 : index
    %126 = vector.load %arg14[%c0_57, %c0_58, %c0_59] : memref<1x1x32xf32, #tpu.memory_space<vmem>>, vector<1x1x32xf32>
    %127 = vector.shape_cast %126 : vector<1x1x32xf32> to vector<1x32xf32>
    %c0_60 = arith.constant 0 : index
    %c0_61 = arith.constant 0 : index
    %c0_62 = arith.constant 0 : index
    %128 = vector.load %arg15[%c0_60, %c0_61, %c0_62] : memref<1x1x32xf32, #tpu.memory_space<vmem>>, vector<1x1x32xf32>
    %129 = vector.shape_cast %128 : vector<1x1x32xf32> to vector<1x32xf32>
    %cst_63 = arith.constant dense<0.000000e+00> : vector<8xf32>
    %130 = vector.multi_reduction <add>, %125, %cst_63 [1] : vector<8x32xf32> to vector<8xf32>
    %131 = vector.shape_cast %130 : vector<8xf32> to vector<8x1xf32>
    %cst_64 = arith.constant 3.200000e+01 : f32
    %132 = vector.broadcast %cst_64 : f32 to vector<8x1xf32>
    %133 = arith.divf %131, %132 : vector<8x1xf32>
    %134 = vector.broadcast %133 : vector<8x1xf32> to vector<8x32xf32>
    %135 = arith.subf %125, %134 : vector<8x32xf32>
    %136 = arith.mulf %135, %135 : vector<8x32xf32>
    %cst_65 = arith.constant dense<0.000000e+00> : vector<8xf32>
    %137 = vector.multi_reduction <add>, %136, %cst_65 [1] : vector<8x32xf32> to vector<8xf32>
    %138 = vector.shape_cast %137 : vector<8xf32> to vector<8x1xf32>
    %cst_66 = arith.constant 3.200000e+01 : f32
    %139 = vector.broadcast %cst_66 : f32 to vector<8x1xf32>
    %140 = arith.divf %138, %139 : vector<8x1xf32>
    %cst_67 = arith.constant 9.99999974E-6 : f32
    %141 = vector.broadcast %cst_67 : f32 to vector<8x1xf32>
    %142 = arith.addf %140, %141 : vector<8x1xf32>
    %143 = math.rsqrt %142 : vector<8x1xf32>
    %144 = vector.broadcast %143 : vector<8x1xf32> to vector<8x32xf32>
    %145 = arith.mulf %135, %144 : vector<8x32xf32>
    %146 = vector.broadcast %127 : vector<1x32xf32> to vector<8x32xf32>
    %147 = arith.mulf %145, %146 : vector<8x32xf32>
    %148 = vector.broadcast %129 : vector<1x32xf32> to vector<8x32xf32>
    %149 = arith.addf %147, %148 : vector<8x32xf32>
    %c0_68 = arith.constant 0 : index
    %c0_69 = arith.constant 0 : index
    %150 = vector.load %arg19[%c0_68, %c0_69] : memref<8x32xf32, #tpu.memory_space<vmem>>, vector<8x32xf32>
    tpu.vector_store %arg19[%c0_68, %c0_69], %149 {strides = array<i32>} : memref<8x32xf32, #tpu.memory_space<vmem>>, vector<8x32xf32>,
    %c1_i32 = arith.constant 1 : i32
    %151 = arith.cmpi eq, %arg0, %c1_i32 : i32
    %152 = arith.extui %151 : i1 to i32
    %c0_i32_70 = arith.constant 0 : i32
    %153 = arith.cmpi ne, %152, %c0_i32_70 : i32
    scf.if %153 {
      %c0_71 = arith.constant 0 : index
      %c0_72 = arith.constant 0 : index
      %154 = vector.load %arg16[%c0_71, %c0_72] : memref<32x128xf32, #tpu.memory_space<vmem>>, vector<32x128xf32>
      %cst_73 = arith.constant dense<0.000000e+00> : vector<8x128xf32>
      %155 = tpu.matmul %149, %154, %cst_73 {dimension_numbers = #tpu.dot_dimension_numbers<[1], [0], [0], [1], [0, 0, 1, 1], [], []>} : vector<8x32xf32>, vector<32x128xf32>, vector<8x128xf32> -> vector<8x128xf32>
      %c0_74 = arith.constant 0 : index
      %c0_75 = arith.constant 0 : index
      %156 = vector.load %arg17[%c0_74, %c0_75] : memref<1x128xf32, #tpu.memory_space<vmem>>, vector<1x128xf32>
      %157 = vector.broadcast %156 : vector<1x128xf32> to vector<8x128xf32>
      %158 = arith.addf %155, %157 : vector<8x128xf32>
      %c0_76 = arith.constant 0 : index
      %c0_77 = arith.constant 0 : index
      %159 = vector.load %arg18[%c0_76, %c0_77] : memref<8x128xf32, #tpu.memory_space<vmem>>, vector<8x128xf32>
      tpu.vector_store %arg18[%c0_76, %c0_77], %158 {strides = array<i32>} : memref<8x128xf32, #tpu.memory_space<vmem>>, vector<8x128xf32>,
    } else {
    }
    return
  }
  func.func @transform_0(%arg0: i32) -> (i32, i32) {
    %c0_i32 = arith.constant 0 : i32
    %c0_i32_0 = arith.constant 0 : i32
    %c0_i32_1 = arith.constant 0 : i32
    return %c0_i32, %c0_i32_0 : i32, i32
  }
  func.func @transform_1(%arg0: i32) -> (i32, i32) {
    %c0_i32 = arith.constant 0 : i32
    %c0_i32_0 = arith.constant 0 : i32
    %c0_i32_1 = arith.constant 0 : i32
    return %c0_i32, %c0_i32_0 : i32, i32
  }
  func.func @transform_2(%arg0: i32) -> (i32, i32) {
    %c0_i32 = arith.constant 0 : i32
    %c0_i32_0 = arith.constant 0 : i32
    %c0_i32_1 = arith.constant 0 : i32
    return %c0_i32, %c0_i32_0 : i32, i32
  }
  func.func @transform_3(%arg0: i32) -> (i32, i32, i32) {
    %c0_i32 = arith.constant 0 : i32
    %c0_i32_0 = arith.constant 0 : i32
    %c0_i32_1 = arith.constant 0 : i32
    return %arg0, %c0_i32, %c0_i32_0 : i32, i32, i32
  }
  func.func @transform_4(%arg0: i32) -> (i32, i32, i32) {
    %c0_i32 = arith.constant 0 : i32
    %c0_i32_0 = arith.constant 0 : i32
    %c0_i32_1 = arith.constant 0 : i32
    return %arg0, %c0_i32, %c0_i32_0 : i32, i32, i32
  }
  func.func @transform_5(%arg0: i32) -> (i32, i32, i32) {
    %c0_i32 = arith.constant 0 : i32
    %c0_i32_0 = arith.constant 0 : i32
    %c0_i32_1 = arith.constant 0 : i32
    return %arg0, %c0_i32, %c0_i32_0 : i32, i32, i32
  }
  func.func @transform_6(%arg0: i32) -> (i32, i32, i32) {
    %c0_i32 = arith.constant 0 : i32
    %c0_i32_0 = arith.constant 0 : i32
    %c0_i32_1 = arith.constant 0 : i32
    return %arg0, %c0_i32, %c0_i32_0 : i32, i32, i32
  }
  func.func @transform_7(%arg0: i32) -> (i32, i32, i32) {
    %c0_i32 = arith.constant 0 : i32
    %c0_i32_0 = arith.constant 0 : i32
    %c0_i32_1 = arith.constant 0 : i32
    return %arg0, %c0_i32, %c0_i32_0 : i32, i32, i32
  }
  func.func @transform_8(%arg0: i32) -> (i32, i32, i32) {
    %c0_i32 = arith.constant 0 : i32
    %c0_i32_0 = arith.constant 0 : i32
    %c0_i32_1 = arith.constant 0 : i32
    return %arg0, %c0_i32, %c0_i32_0 : i32, i32, i32
  }
  func.func @transform_9(%arg0: i32) -> (i32, i32, i32) {
    %c0_i32 = arith.constant 0 : i32
    %c0_i32_0 = arith.constant 0 : i32
    %c0_i32_1 = arith.constant 0 : i32
    return %arg0, %c0_i32, %c0_i32_0 : i32, i32, i32
  }
  func.func @transform_10(%arg0: i32) -> (i32, i32, i32) {
    %c0_i32 = arith.constant 0 : i32
    %c0_i32_0 = arith.constant 0 : i32
    %c0_i32_1 = arith.constant 0 : i32
    return %arg0, %c0_i32, %c0_i32_0 : i32, i32, i32
  }
  func.func @transform_11(%arg0: i32) -> (i32, i32, i32) {
    %c0_i32 = arith.constant 0 : i32
    %c0_i32_0 = arith.constant 0 : i32
    %c0_i32_1 = arith.constant 0 : i32
    return %arg0, %c0_i32, %c0_i32_0 : i32, i32, i32
  }
  func.func @transform_12(%arg0: i32) -> (i32, i32, i32) {
    %c0_i32 = arith.constant 0 : i32
    %c0_i32_0 = arith.constant 0 : i32
    %c0_i32_1 = arith.constant 0 : i32
    return %arg0, %c0_i32, %c0_i32_0 : i32, i32, i32
  }
  func.func @transform_13(%arg0: i32) -> (i32, i32, i32) {
    %c0_i32 = arith.constant 0 : i32
    %c0_i32_0 = arith.constant 0 : i32
    %c0_i32_1 = arith.constant 0 : i32
    return %arg0, %c0_i32, %c0_i32_0 : i32, i32, i32
  }
  func.func @transform_14(%arg0: i32) -> (i32, i32, i32) {
    %c0_i32 = arith.constant 0 : i32
    %c0_i32_0 = arith.constant 0 : i32
    %c0_i32_1 = arith.constant 0 : i32
    return %arg0, %c0_i32, %c0_i32_0 : i32, i32, i32
  }
  func.func @transform_15(%arg0: i32) -> (i32, i32) {
    %c0_i32 = arith.constant 0 : i32
    %c0_i32_0 = arith.constant 0 : i32
    %c0_i32_1 = arith.constant 0 : i32
    return %c0_i32, %c0_i32_0 : i32, i32
  }
  func.func @transform_16(%arg0: i32) -> (i32, i32) {
    %c0_i32 = arith.constant 0 : i32
    %c0_i32_0 = arith.constant 0 : i32
    %c0_i32_1 = arith.constant 0 : i32
    return %c0_i32, %c0_i32_0 : i32, i32
  }
  func.func @transform_17(%arg0: i32) -> (i32, i32) {
    %c0_i32 = arith.constant 0 : i32
    %c0_i32_0 = arith.constant 0 : i32
    %c0_i32_1 = arith.constant 0 : i32
    return %c0_i32, %c0_i32_0 : i32, i32
  }
}

</mosaic_0001>

<bundles_post_ra>
// kernel: tpu_custom_call.1
= control target key start
LH: loop header
LB: loop body
LE: loop exit
PB: predicated region body
PF: predicated region fallthrough
CT: control target
= control target key end

     0   :  { %s4588_s0 = inlined_call_operand.vmem [shape: f32[8,16], index: 0, kind: input, shape index: {}]   ;;  %s4589_s1 = inlined_call_operand.vmem [shape: f32[16,32], index: 1, kind: input, shape index: {}]   ;;  %s4590_s2 = inlined_call_operand.vmem [shape: f32[1,32], index: 2, kind: input, shape index: {}]   ;;  %s4591_s3 = inlined_call_operand.vmem [shape: f32[2,32,96], index: 3, kind: input, shape index: {}]   ;;  %s4592_s4 = inlined_call_operand.vmem [shape: f32[2,1,32], index: 4, kind: input, shape index: {}]   ;;  %s4593_s5 = inlined_call_operand.vmem [shape: f32[2,32,32], index: 5, kind: input, shape index: {}]   ;;  %s4594_s6 = inlined_call_operand.vmem [shape: f32[2,1,32], index: 6, kind: input, shape index: {}]   ;;  %s4595_s7 = inlined_call_operand.vmem [shape: bf16[2,32,2048], index: 7, kind: input, shape index: {}]   ;;  %s4596_s8 = inlined_call_operand.vmem [shape: f32[2,1,2048], index: 8, kind: input, shape index: {}]   ;;  %s4597_s9 = inlined_call_operand.vmem [shape: bf16[2,2048,32], index: 9, kind: input, shape index: {}]   ;;  %s4598_s10 = inlined_call_operand.vmem [shape: f32[2,1,32], index: 10, kind: input, shape index: {}]   ;;  %s4599_s11 = inlined_call_operand.vmem [shape: f32[2,1,32], index: 11, kind: input, shape index: {}]   ;;  %s4600_s12 = inlined_call_operand.vmem [shape: f32[2,1,32], index: 12, kind: input, shape index: {}]   ;;  %s4601_s13 = inlined_call_operand.vmem [shape: f32[2,1,32], index: 13, kind: input, shape index: {}]   ;;  %s4602_s14 = inlined_call_operand.vmem [shape: f32[2,1,32], index: 14, kind: input, shape index: {}]   ;;  %s4603_s15 = inlined_call_operand.vmem [shape: f32[32,128], index: 15, kind: input, shape index: {}]   ;;  %s4604_s16 = inlined_call_operand.vmem [shape: f32[1,128], index: 16, kind: input, shape index: {}]   ;;  %s4605_s17 = inlined_call_operand.hbm [shape: f32[8,128], index: 17, kind: output, shape index: {}]  }
   0x1   :  { %4610 = sst [smem:[#allocation8_spill]] %s4588_s0 }
   0x2   :  { %4611 = sst [smem:[#allocation9_spill]] %s4589_s1 }
   0x3   :  { %4612 = sst [smem:[#allocation10_spill]] %s4591_s3 }
   0x4   :  { %4613 = sst [smem:[#allocation11_spill]] %s4593_s5 }
   0x5   :  { %4614 = sst [smem:[#allocation12_spill]] %s4595_s7 }
   0x6   :  { %4615 = sst [smem:[#allocation13_spill]] %s4596_s8 }
   0x7   :  { %4616 = sst [smem:[#allocation14_spill]] %s4603_s15 }
   0x8   :  { %4617 = sst [smem:[#allocation15_spill]] %s4604_s16 }
   0x9   :  { %4618 = sst [smem:[#allocation16_spill]] %s4605_s17 }
   0xa   :  { %22 = vsyncpa [#allocation4], 0  ;;  %s4130_s24 = smov 0  }
   0xb LB: > { %4619 = sst [smem:[#allocation6_spill]] %s4022_s24  ;;  %s4136_s25 = sadd.s32 4294967295, %s4022_s24   ;;  %s4022_s24 = sphi %s4130_s24, %s28_s24  }
   0xc   : > { %p3071_p0 = scmp.ge.s32.totalorder %s4022_s24, 1  ;;  %p578_p1 = scmp.lt.s32.totalorder %s4022_s24, 3 }
   0xe   : > { %p579_p2 = pnand %p3071_p0, %p578_p1 }
  0x10   : > { %582 = sbr.rel (%p579_p2) target bundleno = 2252 (0x8cc), region = 88 }
  0x15   : > { %p665_p3 = scmp.lt.s32.totalorder %s4136_s25, 1  ;;  %s4620_s3 = sld [smem:[#allocation10_spill]] }
  0x16   : > { %s4621_s5 = sld [smem:[#allocation11_spill]]  ;;  %p3081_p4 = scmp.ne.s32.totalorder %s4136_s25, 0 }
  0x17   : > { %s4142_s26 = scalar_select %p665_p3, %s4136_s25, 1 }
  0x18   : > { %s4622_s7 = sld [smem:[#allocation12_spill]] }
  0x19   : > { %s3759_s27 = sshll.u32 %s4142_s26, 5  ;;  %s3761_s17 = sshll.u32 %s4142_s26, 8 }
  0x1a   : > { %s3078_s29 = sshll.u32 %s4142_s26, 4  ;;  %s4623_s8 = sld [smem:[#allocation13_spill]] }
  0x1b   : > { %s4152_s19 = scalar_lea.vmem %s4620_s3, %s3759_s27  ;;  %s3762_s3 = sshll.u32 %s4142_s26, 10 }
  0x1c   : > { %s4157_s21 = scalar_lea.vmem %s4621_s5, %s3759_s27  ;;  %s4179_s20 = scalar_lea.vmem %s4597_s9, %s3762_s3 }
  0x1d   : > { %s697_s24 = scalar_lea.vmem %s4598_s10, %s4142_s26  ;;  %s700_s16 = scalar_lea.vmem %s4599_s11, %s4142_s26 }
  0x1e   : > { %s4167_s28 = scalar_lea.vmem %s4622_s7, %s3761_s17  ;;  %s703_s0 = scalar_lea.vmem %s4600_s12, %s4142_s26 }
  0x1f   : > { %s709_s3 = scalar_lea.vmem %s4602_s14, %s4142_s26  ;;  %714 = sbr.rel (%p3081_p4) target bundleno = 173 (0xad), region = 92 }
  0x20   : > { %s4173_s18 = scalar_lea.vmem %s4623_s8, %s3078_s29  ;;  %s706_s8 = scalar_lea.vmem %s4601_s13, %s4142_s26 }
  0x21   : > { %4624 = sst [smem:[#allocation7_spill]] %s4173_s18 }
  0x22   : > { %s4625_s23 = sld [smem:[#allocation9_spill]] (!%p3081_p4) }
  0x23   : > { %s4626_s29 = sld [smem:[#allocation8_spill]] (!%p3081_p4) }
  0x24   : > { %vm722_vm0 = vcmask 130048   ;;  %v3953_v3 = vld [vmem:[%s4590_s2] ss:$0 sm:$0xff]  ;;  %vm746_vm1 = vcmask 261120  }
  0x28   : > { %v717_v0 = vld [vmem:[%s4625_s23 + $0x8] sm:$0xff]  ;;  %v716_v1 = vld [vmem:[%s4625_s23] sm:$0xff] }
  0x29   : > { %740 = vmatpush.msra.mxu0 %v717_v0  ;;  %v715_v2 = vld [vmem:[%s4626_s29] sm:$0xff] }
  0x2b   : > { %741 = vmatpush.msra.mxu0 %v716_v1 }
  0x2c   : > { %3082 = vmatmul.msk.f32.vlgmr.msra.gmra.mxu0 %vm722_vm0, %v715_v2 }
  0xa9   : > { %v743_v4 = vpop.f32.mrf.mxu0 }
  0xaa   : > { %v744_v5 = vadd.f32 %v3953_v3, %v743_v4 }
  0xac   : > { %747 = vst.msk [vmem:[#allocation2] sm:$0xff] %vm746_vm1, %v744_v5 }
  0xad PF: > { %v752_v6 = vld [vmem:[%s4152_s19 + $0x18] sm:$0xff]  ;;  %v751_v7 = vld [vmem:[%s4152_s19 + $0x10] sm:$0xff]  ;;  %v750_v8 = vld [vmem:[%s4152_s19 + $0x8] sm:$0xff]  ;;  %vm753_vm2 = vcmask 261120   ;;  %s4627_s22 = scalar_lea.vmem %s4592_s4, %s4142_s26  ;;  %s4024_s5 = smov 72   ;;  %vm785_vm3 = vcmask 64512  }
  0xae   : > { %769 = vmatpush.msra.mxu0 %v752_v6  ;;  %v749_v9 = vld [vmem:[%s4152_s19] sm:$0xff]  ;;  %s4025_s15 = smov 96   ;;  %s4026_s19 = smov 120   ;;  %v1063_v5 = vld [vmem:[%s4157_s21 + $0x18] sm:$0xff]  ;;  %v1062_v6 = vld [vmem:[%s4157_s21 + $0x10] sm:$0xff]  ;;  %vm1056_vm4 = vcmask 130048  }
  0xaf   : > { %v3954_v11 = vld [vmem:[%s4627_s22] ss:$0 sm:$0xff]  ;;  %s4027_s7 = smov 88   ;;  %s4028_s17 = smov 112   ;;  %vm1058_vm5 = vcmask 195584  }
  0xb0   : > { %770 = vmatpush.msra.mxu0 %v751_v7  ;;  %s4029_s29 = smov 80   ;;  %s4030_s18 = smov 104   ;;  %v1061_v7 = vld [vmem:[%s4157_s21 + $0x8] sm:$0xff] }
  0xb1   : > { %s4031_s30 = smov 64   ;;  %s4032_s1 = smov 40  }
  0xb2   : > { %771 = vmatpush.msra.mxu0 %v750_v8  ;;  %s4033_s27 = smov 56   ;;  %s4034_s22 = smov 48   ;;  %v1060_v8 = vld [vmem:[%s4157_s21] sm:$0xff] }
  0xb3   : > { %v4218_v10 = vld [vmem:[#allocation2] sm:$0xff]  ;;  %p3753_p5 = scmp.ne.s32.totalorder %s4136_s25, 1 }
  0xb4   : > { %772 = vmatpush.msra.mxu0 %v749_v9 }
  0xb5   : > { %3083 = vmatmul.msk.f32.vlgmr.msra.gmra.mxu0 %vm753_vm2, %v4218_v10 }
 0x132   : > { %v4227_v12 = vpop.f32.mrf.mxu0 }
 0x133   : > { %980 = vrot.lane.b32.xlu2 %v4227_v12, %s4024_s5  ;;  %783 = vrot.lane.b32.xlu0 %v4227_v12, %s4025_s15  ;;  %v781_v13 = vadd.f32 %v3954_v11, %v4227_v12  ;;  %s4035_s5 = smov 16   ;;  %s4036_s15 = smov 8  }
 0x135   : > { %848 = vrot.lane.b32.xlu1 %v781_v13, %s4026_s19  ;;  %s4037_s19 = smov 24  }
 0x13b   : > { %850 = vrot.lane.b32.xlu0 %v4227_v12, %s4027_s7  ;;  %913 = vrot.lane.b32.xlu2 %v781_v13, %s4028_s17 }
 0x13d   : > { %915 = vrot.lane.b32.xlu1 %v4227_v12, %s4029_s29  ;;  %s4628_s29 = scalar_lea.vmem %s4594_s6, %s4142_s26 }
 0x143   : > { %978 = vrot.lane.b32.xlu0 %v781_v13, %s4030_s18 }
 0x18d   : > { %v981_v14 = vpop.permute.xlu2 %980 }
 0x18e   : > { %3093 = vmatpush.xpose.msk.msrb.mxu0 %vm785_vm3, %v981_v14 }
 0x195   : > { %v914_v19 = vpop.permute.xlu2 %913 }
 0x1a5   : > { %v784_v15 = vpop.permute.xlu0 %783 }
 0x1a6   : > { %3084 = vmatpush.xpose.msk.msra.mxu1 %vm785_vm3, %v784_v15 }
 0x1a7   : > { %v849_v16 = vpop.permute.xlu1 %848 }
 0x1a9   : > { %3085 = vmatmul.msk.f32.vlgmr.msra.gmra.mxu1 %vm785_vm3, %v781_v13 }
 0x1ad   : > { %v851_v17 = vpop.permute.xlu0 %850 }
 0x1ae   : > { %3087 = vmatpush.xpose.msk.msra.mxu3 %vm785_vm3, %v851_v17 }
 0x1af   : > { %v916_v18 = vpop.permute.xlu1 %915 }
 0x1b0   : > { %3090 = vmatpush.xpose.msk.msrb.mxu1 %vm785_vm3, %v916_v18 }
 0x1b1   : > { %3088 = vmatmul.msk.f32.vlgmr.msra.gmra.mxu3 %vm785_vm3, %v849_v16  ;;  %v3955_v16 = vld [vmem:[%s4628_s29] ss:$0 sm:$0xff] }
 0x1b3   : > { %3091 = vmatmul.msk.f32.vlgmr.msrb.gmra.mxu1 %vm785_vm3, %v914_v19 }
 0x1b4   : > { %1083 = vmatpush.msra.mxu1 %v1063_v5  ;;  %v3115_v5 = vld [vmem:[%s4167_s28 + $0x10] sm:$0xf] }
 0x1b5   : > { %v979_v20 = vpop.permute.xlu0 %978 }
 0x1b6   : > { %3094 = vmatmul.msk.f32.vlgmr.msrb.gmra.mxu0 %vm785_vm3, %v979_v20  ;;  %1084 = vmatpush.msra.mxu1 %v1062_v6 }
 0x1b8   : > { %1085 = vmatpush.msra.mxu1 %v1061_v7 }
 0x1ba   : > { %1086 = vmatpush.msra.mxu1 %v1060_v8  ;;  %v3773_v8 = vld [vmem:[%s4167_s28 + $0x4c] sm:$0xf0] }
 0x226   : > { %v808_v21 = vpop.f32.mrf.mxu1 }
 0x227   : > { %v811_v22 = vsel %vm785_vm3, %v808_v21, -inf }
 0x228   : > { %812 = vmax.xlane.f32.xlu1 %v811_v22 }
 0x230   : > { %v938_v23 = vpop.f32.mrf.mxu1 }
 0x231   : > { %v941_v24 = vsel %vm785_vm3, %v938_v23, -inf }
 0x232   : > { %942 = vmax.xlane.f32.xlu0 %v941_v24 }
 0x233   : > { %v1003_v27 = vpop.f32.mrf.mxu0 }
 0x234   : > { %v873_v25 = vpop.f32.mrf.mxu3  ;;  %v1006_v28 = vsel %vm785_vm3, %v1003_v27, -inf }
 0x235   : > { %v876_v26 = vsel %vm785_vm3, %v873_v25, -inf }
 0x236   : > { %877 = vmax.xlane.f32.xlu2 %v876_v26 }
 0x23e   : > { %1007 = vmax.xlane.f32.xlu2 %v1006_v28 }
 0x246   : > { %822 = vrot.lane.b32.xlu0 %v4227_v12, %s4031_s30  ;;  %s4631_s30 = sld [smem:[#allocation15_spill]] (!%p3753_p5) }
 0x24e   : > { %1017 = vrot.lane.b32.xlu0 %v4227_v12, %s4032_s1 }
 0x29b   : > { %v813_v29 = vpop.xlane.xlu1 %812 }
 0x29c   : > { %v814_v30 = vsub.f32 %v808_v21, %v813_v29  ;;  %v4038_v21 = vmov 32.0  }
 0x29e   : > { %v815_v31 = vmul.f32 1.442695, %v814_v30 }
 0x2a0   : > { %3961 = vpow2.f32 %v815_v31 }
 0x2a5   : > { %v943_v32 = vpop.xlane.xlu0 %942 }
 0x2a6   : > { %v3962_v33 = vpop.eup %3961  ;;  %v944_v34 = vsub.f32 %v938_v23, %v943_v32  ;;  %v3163_v32 = vld [vmem:[%s4167_s28 + $0x80] sm:$0xf] }
 0x2a7   : > { %v817_v35 = vsel %vm785_vm3, %v3962_v33, 0.0 }
 0x2a8   : > { %v945_v36 = vmul.f32 1.442695, %v944_v34  ;;  %818 = vadd.xlane.f32.xlu1 %v817_v35  ;;  %v3779_v34 = vld [vmem:[%s4167_s28 + $0x84] sm:$0xf] }
 0x2a9   : > { %v878_v37 = vpop.xlane.xlu2 %877 }
 0x2aa   : > { %3963 = vpow2.f32 %v945_v36  ;;  %v879_v42 = vsub.f32 %v873_v25, %v878_v37  ;;  %v3165_v36 = vld [vmem:[%s4167_s28 + $0xc0] sm:$0xf0]  ;;  %v3171_v37 = vld [vmem:[%s4167_s28 + $0x88] sm:$0xf] }
 0x2ac   : > { %v880_v44 = vmul.f32 1.442695, %v879_v42  ;;  %v3173_v42 = vld [vmem:[%s4167_s28 + $0xc8] sm:$0xf0] }
 0x2b0   : > { %v3964_v38 = vpop.eup %3963 }
 0x2b1   : > { %v1008_v39 = vpop.xlane.xlu2 %1007  ;;  %v947_v40 = vsel %vm785_vm3, %v3964_v38, 0.0 }
 0x2b2   : > { %v1009_v41 = vsub.f32 %v1003_v27, %v1008_v39  ;;  %948 = vadd.xlane.f32.xlu1 %v947_v40  ;;  %v3168_v39 = vor.u32 %v3779_v34, %v3165_v36  ;;  %v3783_v34 = vld [vmem:[%s4167_s28 + $0xa4] sm:$0xf]  ;;  %v3203_v36 = vld [vmem:[%s4167_s28 + $0xa8] sm:$0xf] }
 0x2b4   : > { %v1010_v43 = vmul.f32 1.442695, %v1009_v41  ;;  %v3780_v41 = vld [vmem:[%s4167_s28 + $0x8c] sm:$0xf]  ;;  %1382 = vmatpush.bf16.msra.mxu0 %v3168_v39 }
 0x2b5   : > { %v3784_v39 = vld [vmem:[%s4167_s28 + $0xac] sm:$0xf] }
 0x2b6   : > { %3965 = vpow2.f32 %v1010_v43  ;;  %v3176_v43 = vor.u32 %v3780_v41, %v3173_v42 }
 0x2b7   : > { %3967 = vpow2.f32 %v880_v44  ;;  %v3099_v44 = vld [vmem:[%s4167_s28] sm:$0xf] }
 0x2b8   : > { %v823_v45 = vpop.permute.xlu0 %822  ;;  %1408 = vmatpush.bf16.msrb.mxu1 %v3176_v43  ;;  %v3131_v43 = vld [vmem:[%s4167_s28 + $0x20] sm:$0xf] }
 0x2b9   : > { %843 = vmatpush.msra.mxu2 %v823_v45  ;;  %v3771_v45 = vld [vmem:[%s4167_s28 + $0x3c] sm:$0xf0] }
 0x2bc   : > { %v3966_v46 = vpop.eup %3965 }
 0x2bd   : > { %v1012_v47 = vsel %vm785_vm3, %v3966_v46, 0.0  ;;  %v3968_v48 = vpop.eup %3967 }
 0x2be   : > { %1013 = vadd.xlane.f32.xlu2 %v1012_v47  ;;  %v882_v49 = vsel %vm785_vm3, %v3968_v48, 0.0  ;;  %v3100_v47 = vor.u32 %v3771_v45, %v3099_v44  ;;  %v3775_v44 = vld [vmem:[%s4167_s28 + $0x5c] sm:$0xf0] }
 0x2c0   : > { %v1018_v58 = vpop.permute.xlu0 %1017 }
 0x2c6   : > { %883 = vadd.xlane.f32.xlu2 %v882_v49  ;;  %v3107_v49 = vld [vmem:[%s4167_s28 + $0x8] sm:$0xf] }
 0x2cb   : > { %887 = vrot.lane.b32.xlu1 %v4227_v12, %s4033_s27 }
 0x2de   : > { %952 = vrot.lane.b32.xlu2 %v4227_v12, %s4034_s22 }
 0x31b   : > { %v819_v50 = vpop.xlane.xlu1 %818 }
 0x31c   : > { %3969 = vrcp.f32 %v819_v50  ;;  %v3772_v50 = vld [vmem:[%s4167_s28 + $0x44] sm:$0xf0] }
 0x322   : > { %v3970_v51 = vpop.eup %3969 }
 0x323   : > { %v821_v52 = vmul.f32 %v3970_v51, %v3962_v33  ;;  %v3787_v33 = vld [vmem:[%s4167_s28 + $0xbc] sm:$0xf0] }
 0x324   : > { %v3164_v35 = vor.u32 %v3787_v33, %v3163_v32  ;;  %v3195_v32 = vld [vmem:[%s4167_s28 + $0xa0] sm:$0xf] }
 0x325   : > { %3086 = vmatmul.msk.f32.vlgmr.msra.gmra.mxu2 %vm785_vm3, %v821_v52  ;;  %v949_v54 = vpop.xlane.xlu1 %948  ;;  %v3108_v52 = vor.u32 %v3772_v50, %v3107_v49  ;;  %v3791_v33 = vld [vmem:[%s4167_s28 + $0xdc] sm:$0xf0]  ;;  %v3139_v49 = vld [vmem:[%s4167_s28 + $0x28] sm:$0xf] }
 0x326   : > { %3971 = vrcp.f32 %v949_v54  ;;  %v3109_v54 = vld [vmem:[%s4167_s28 + $0x48] sm:$0xf0]  ;;  %v3196_v41 = vor.u32 %v3791_v33, %v3195_v32  ;;  %v3776_v50 = vld [vmem:[%s4167_s28 + $0x64] sm:$0xf0]  ;;  %v3823_v32 = vld [vmem:[%s4179_s20 + $0xe0] sm:$0xff] }
 0x327   : > { %v3799_v33 = vld [vmem:[%s4179_s20 + $0x20] sm:$0xff] }
 0x32c   : > { %v3972_v57 = vpop.eup %3971 }
 0x32d   : > { %v951_v62 = vmul.f32 %v3972_v57, %v3964_v38  ;;  %v3788_v38 = vld [vmem:[%s4167_s28 + $0xc4] sm:$0xf0]  ;;  %v3179_v57 = vld [vmem:[%s4167_s28 + $0x90] sm:$0xf] }
 0x32e   : > { %v3172_v40 = vor.u32 %v3788_v38, %v3171_v37  ;;  %v3792_v38 = vld [vmem:[%s4167_s28 + $0xe4] sm:$0xf0] }
 0x32f   : > { %v3204_v45 = vor.u32 %v3792_v38, %v3203_v36  ;;  %v3822_v36 = vld [vmem:[%s4179_s20 + $0xd8] sm:$0xff] }
 0x330   : > { %v3798_v38 = vld [vmem:[%s4179_s20 + $0x18] sm:$0xff] }
 0x331   : > { %v1014_v53 = vpop.xlane.xlu2 %1013 }
 0x339   : > { %v884_v55 = vpop.xlane.xlu2 %883 }
 0x33a   : > { %3973 = vrcp.f32 %v884_v55 }
 0x33b   : > { %3975 = vrcp.f32 %v1014_v53  ;;  %v3764_v53 = vld [vmem:[%s4167_s28 + $0xc] sm:$0xf] }
 0x33c   : > { %3977 = vrcp.f32 %v4038_v21  ;;  %v3112_v55 = vor.u32 %v3764_v53, %v3109_v54  ;;  %v3132_v53 = vor.u32 %v3775_v44, %v3131_v43  ;;  %v3813_v43 = vld [vmem:[%s4179_s20 + $0x90] sm:$0xff]  ;;  %v3804_v44 = vld [vmem:[%s4179_s20 + $0x48] sm:$0xff] }
 0x33d   : > { %v888_v56 = vpop.permute.xlu1 %887 }
 0x33e   : > { %908 = vmatpush.msrb.mxu2 %v888_v56  ;;  %1409 = vmatpush.bf16.msrb.mxu1 %v3112_v55  ;;  %v3140_v55 = vor.u32 %v3776_v50, %v3139_v49  ;;  %v3842_v49 = vld [vmem:[%s4179_s20 + $0x178] sm:$0xff] }
 0x33f   : > { %v3858_v50 = vld [vmem:[%s4179_s20 + $0x1f8] sm:$0xff] }
 0x340   : > { %1038 = vmatpush.msra.mxu2 %v1018_v58  ;;  %v3974_v59 = vpop.eup %3973  ;;  %v3789_v58 = vld [vmem:[%s4167_s28 + $0xcc] sm:$0xf0] }
 0x341   : > { %v953_v60 = vpop.permute.xlu2 %952  ;;  %v886_v61 = vmul.f32 %v3974_v59, %v3968_v48  ;;  %v3976_v63 = vpop.eup %3975  ;;  %v3101_v48 = vld [vmem:[%s4167_s28 + $0x40] sm:$0xf0]  ;;  %v3781_v59 = vld [vmem:[%s4167_s28 + $0x94] sm:$0xf] }
 0x342   : > { %973 = vmatpush.msrb.mxu3 %v953_v60  ;;  %v1016_v0 = vmul.f32 %v3976_v63, %v3966_v46  ;;  %v3978_v22 = vpop.eup %3977  ;;  %v3763_v46 = vld [vmem:[%s4167_s28 + $0x4] sm:$0xf]  ;;  %v3187_v63 = vld [vmem:[%s4167_s28 + $0x98] sm:$0xf] }
 0x343   : > { %3089 = vmatmul.msk.f32.vlgmr.msrb.gmra.mxu2 %vm785_vm3, %v886_v61  ;;  %3092 = vmatmul.msk.f32.vlgmr.msrb.gmra.mxu3 %vm785_vm3, %v951_v62  ;;  %v1098_v23 = vmul.f32 32.0, %v3978_v22  ;;  %vm1102_vm6 = vweird.f32 %v3978_v22  ;;  %v3104_v51 = vor.u32 %v3763_v46, %v3101_v48  ;;  %v3180_v61 = vor.u32 %v3789_v58, %v3179_v57  ;;  %v3181_v62 = vld [vmem:[%s4167_s28 + $0xd0] sm:$0xf0]  ;;  %v3133_v48 = vld [vmem:[%s4167_s28 + $0x60] sm:$0xf0] }
 0x344   : > { %1369 = vmatpush.bf16.msra.mxu3 %v3164_v35  ;;  %1395 = vmatpush.bf16.msrb.mxu2 %v3172_v40  ;;  %v3197_v35 = vld [vmem:[%s4167_s28 + $0xe0] sm:$0xf0]  ;;  %v3205_v40 = vld [vmem:[%s4167_s28 + $0xe8] sm:$0xf0]  ;;  %v3211_v57 = vld [vmem:[%s4167_s28 + $0xb0] sm:$0xf] }
 0x345   : > { %v1099_v24 = vsub.f32 1.0, %v1098_v23  ;;  %1383 = vmatpush.bf16.msra.mxu0 %v3104_v51  ;;  %v3200_v42 = vor.u32 %v3783_v34, %v3197_v35  ;;  %v3208_v46 = vor.u32 %v3784_v39, %v3205_v40  ;;  %v3768_v51 = vld [vmem:[%s4167_s28 + $0x2c] sm:$0xf]  ;;  %v3793_v58 = vld [vmem:[%s4167_s28 + $0xec] sm:$0xf0]  ;;  %v3815_v34 = vld [vmem:[%s4179_s20 + $0xa0] sm:$0xff] }
 0x346   : > { %v3806_v35 = vld [vmem:[%s4179_s20 + $0x58] sm:$0xff]  ;;  %v3805_v40 = vld [vmem:[%s4179_s20 + $0x50] sm:$0xff] }
 0x347   : > { %v1100_v25 = vmul.f32 %v3978_v22, %v1099_v24  ;;  %v3814_v39 = vld [vmem:[%s4179_s20 + $0x98] sm:$0xff] }
 0x348   : > { %1370 = vmatpush.bf16.msra.mxu3 %v3100_v47  ;;  %1396 = vmatpush.bf16.msrb.mxu2 %v3108_v52  ;;  %v3767_v47 = vld [vmem:[%s4167_s28 + $0x24] sm:$0xf]  ;;  %v3141_v52 = vld [vmem:[%s4167_s28 + $0x68] sm:$0xf0] }
 0x349   : > { %v1101_v26 = vadd.f32 %v3978_v22, %v1100_v25  ;;  %v3136_v54 = vor.u32 %v3767_v47, %v3133_v48  ;;  %v3803_v47 = vld [vmem:[%s4179_s20 + $0x40] sm:$0xff] }
 0x34a   : > { %v3819_v48 = vld [vmem:[%s4179_s20 + $0xc0] sm:$0xff] }
 0x34b   : > { %3095 = vmatmul.msk.f32.vlgmr.msra.gmra.mxu2 %vm785_vm3, %v1016_v0  ;;  %v4271_v27 = vsel %vm1102_vm6, %v3978_v22, %v1101_v26  ;;  %v3790_v0 = vld [vmem:[%s4167_s28 + $0xd4] sm:$0xf0]  ;;  %v3956_v26 = vld [vmem:[%s700_s16] ss:$0 sm:$0xff] }
 0x34c   : > { %1421 = vmatpush.bf16.msrb.mxu3 %v3180_v61  ;;  %v3219_v61 = vld [vmem:[%s4167_s28 + $0xb8] sm:$0xf] }
 0x3a8   : > { %v845_v1 = vpop.f32.mrf.mxu2 }
 0x3c6   : > { %v910_v2 = vpop.f32.mrf.mxu2  ;;  %v975_v3 = vpop.f32.mrf.mxu3 }
 0x3c7   : > { %1048 = vrot.lane.b32.xlu1 %v975_v3, %s4035_s5  ;;  %1044 = vrot.lane.b32.xlu0 %v910_v2, %s4036_s15  ;;  %v3188_v2 = vor.u32 %v3790_v0, %v3187_v63  ;;  %v3782_v3 = vld [vmem:[%s4167_s28 + $0x9c] sm:$0xf] }
 0x3c8   : > { %v3786_v63 = vld [vmem:[%s4167_s28 + $0xbc] sm:$0xf] }
 0x3c9   : > { %1447 = vmatpush.bf16.msra.mxu2 %v3188_v2  ;;  %v3221_v0 = vld [vmem:[%s4167_s28 + $0xf8] sm:$0xf0] }
 0x3ce   : > { %v1040_v4 = vpop.f32.mrf.mxu2 }
 0x3cf   : > { %1052 = vrot.lane.b32.xlu0 %v1040_v4, %s4037_s19  ;;  %v3189_v4 = vld [vmem:[%s4167_s28 + $0xd8] sm:$0xf0]  ;;  %s4630_s19 = sld [smem:[#allocation14_spill]] (!%p3753_p5) }
 0x3d0   : > { %v3192_v7 = vor.u32 %v3782_v3, %v3189_v4  ;;  %v3147_v3 = vld [vmem:[%s4167_s28 + $0x30] sm:$0xf] }
 0x3d1   : > { %v3777_v4 = vld [vmem:[%s4167_s28 + $0x6c] sm:$0xf0] }
 0x439   : > { %v1045_v9 = vpop.permute.xlu0 %1044  ;;  %v1049_v12 = vpop.permute.xlu1 %1048 }
 0x43a   : > { %v1055_v11 = vsel %vm785_vm3, %v845_v1, %v1045_v9  ;;  %v3184_v1 = vor.u32 %v3781_v59, %v3181_v62  ;;  %v3765_v9 = vld [vmem:[%s4167_s28 + $0x14] sm:$0xf]  ;;  %v3794_v62 = vld [vmem:[%s4167_s28 + $0xf4] sm:$0xf0] }
 0x43b   : > { %v1057_v13 = vsel %vm1056_vm4, %v1055_v11, %v1049_v12  ;;  %v3116_v11 = vor.u32 %v3773_v8, %v3115_v5  ;;  %v3117_v12 = vld [vmem:[%s4167_s28 + $0x50] sm:$0xf0]  ;;  %v3220_v5 = vor.u32 %v3794_v62, %v3219_v61  ;;  %v3832_v61 = vld [vmem:[%s4179_s20 + $0x128] sm:$0xff] }
 0x43c   : > { %1434 = vmatpush.bf16.msrb.mxu0 %v3184_v1  ;;  %v3785_v59 = vld [vmem:[%s4167_s28 + $0xb4] sm:$0xf]  ;;  %v3212_v1 = vor.u32 %v3793_v58, %v3211_v57  ;;  %v3848_v62 = vld [vmem:[%s4179_s20 + $0x1a8] sm:$0xff] }
 0x43d   : > { %1422 = vmatpush.bf16.msrb.mxu3 %v3116_v11  ;;  %v3149_v8 = vld [vmem:[%s4167_s28 + $0x70] sm:$0xf0]  ;;  %v3778_v11 = vld [vmem:[%s4167_s28 + $0x74] sm:$0xf0] }
 0x43e   : > { %v3833_v57 = vld [vmem:[%s4179_s20 + $0x130] sm:$0xff] }
 0x43f   : > { %v3849_v58 = vld [vmem:[%s4179_s20 + $0x1b0] sm:$0xff] }
 0x441   : > { %v1053_v14 = vpop.permute.xlu0 %1052 }
 0x442   : > { %v1059_v15 = vsel %vm1058_vm5, %v1057_v13, %v1053_v14  ;;  %v3123_v13 = vld [vmem:[%s4167_s28 + $0x18] sm:$0xf] }
 0x443   : > { %3096 = vmatmul.msk.f32.vlgmr.msra.gmra.mxu1 %vm753_vm2, %v1059_v15  ;;  %v3774_v14 = vld [vmem:[%s4167_s28 + $0x54] sm:$0xf0]  ;;  %v3120_v15 = vor.u32 %v3765_v9, %v3117_v12  ;;  %v3770_v12 = vld [vmem:[%s4167_s28 + $0x3c] sm:$0xf] }
 0x444   : > { %1460 = vmatpush.bf16.msra.mxu1 %v3192_v7  ;;  %v3769_v7 = vld [vmem:[%s4167_s28 + $0x34] sm:$0xf]  ;;  %v3155_v9 = vld [vmem:[%s4167_s28 + $0x38] sm:$0xf] }
 0x445   : > { %1435 = vmatpush.bf16.msrb.mxu0 %v3120_v15  ;;  %v3152_v15 = vor.u32 %v3769_v7, %v3149_v8  ;;  %v3830_v7 = vld [vmem:[%s4179_s20 + $0x118] sm:$0xff] }
 0x446   : > { %v3846_v8 = vld [vmem:[%s4179_s20 + $0x198] sm:$0xff] }
 0x4c0   : > { %v1088_v17 = vpop.f32.mrf.mxu1 }
 0x4c1   : > { %v1089_v18 = vadd.f32 %v3955_v16, %v1088_v17  ;;  %v3124_v16 = vor.u32 %v3774_v14, %v3123_v13  ;;  %v3766_v17 = vld [vmem:[%s4167_s28 + $0x1c] sm:$0xf]  ;;  %v3148_v14 = vor.u32 %v3777_v4, %v3147_v3 }
 0x4c2   : > { %v3157_v13 = vld [vmem:[%s4167_s28 + $0x78] sm:$0xf0] }
 0x4c3   : > { %v1091_v19 = vadd.f32 %v1089_v18, %v4218_v10  ;;  %v3125_v18 = vld [vmem:[%s4167_s28 + $0x58] sm:$0xf0]  ;;  %1448 = vmatpush.bf16.msra.mxu2 %v3124_v16  ;;  %v3156_v16 = vor.u32 %v3778_v11, %v3155_v9  ;;  %v3836_v9 = vld [vmem:[%s4179_s20 + $0x148] sm:$0xff] }
 0x4c4   : > { %v3838_v3 = vld [vmem:[%s4179_s20 + $0x158] sm:$0xff]  ;;  %v3852_v11 = vld [vmem:[%s4179_s20 + $0x1c8] sm:$0xff] }
 0x4c5   : > { %v1094_v20 = vsel %vm753_vm2, %v1091_v19, 0.0  ;;  %v3854_v4 = vld [vmem:[%s4179_s20 + $0x1d8] sm:$0xff] }
 0x4c6   : > { %1095 = vadd.xlane.f32.xlu2 %v1094_v20 }
 0x539   : > { %v1096_v10 = vpop.xlane.xlu2 %1095 }
 0x53a   : > { %v1104_v28 = vmul.f32 %v4271_v27, %v1096_v10 }
 0x53c   : > { %v4274_v29 = vsub.f32 %v1091_v19, %v1104_v28  ;;  %v3128_v19 = vor.u32 %v3766_v17, %v3125_v18  ;;  %v3957_v28 = vld [vmem:[%s703_s0] ss:$0 sm:$0xff]  ;;  %v3160_v17 = vor.u32 %v3770_v12, %v3157_v13  ;;  %v3810_v18 = vld [vmem:[%s4179_s20 + $0x78] sm:$0xff]  ;;  %v3829_v12 = vld [vmem:[%s4179_s20 + $0x110] sm:$0xff] }
 0x53d   : > { %v3845_v13 = vld [vmem:[%s4179_s20 + $0x190] sm:$0xff] }
 0x53e   : > { %v1106_v30 = vmul.f32 %v4274_v29, %v4274_v29  ;;  %1461 = vmatpush.bf16.msra.mxu1 %v3128_v19  ;;  %v3826_v19 = vld [vmem:[%s4179_s20 + $0xf8] sm:$0xff] }
 0x540   : > { %v1107_v31 = vsel %vm753_vm2, %v1106_v30, 0.0 }
 0x541   : > { %1108 = vadd.xlane.f32.xlu1 %v1107_v31 }
 0x5b4   : > { %v1109_v56 = vpop.xlane.xlu1 %1108 }
 0x5b5   : > { %v1110_v60 = vmul.f32 %v1109_v56, %v4271_v27  ;;  %v3144_v56 = vor.u32 %v3768_v51, %v3141_v52  ;;  %v3795_v51 = vld [vmem:[%s4179_s20] sm:$0xff] }
 0x5b6   : > { %v3811_v52 = vld [vmem:[%s4179_s20 + $0x80] sm:$0xff] }
 0x5b7   : > { %v1111_v6 = vadd.f32 1e-05, %v1110_v60  ;;  %v3213_v60 = vld [vmem:[%s4167_s28 + $0xf0] sm:$0xf0]  ;;  %s4629_s28 = sld [smem:[#allocation7_spill]] }
 0x5b8   : > { %v3216_v2 = vor.u32 %v3785_v59, %v3213_v60  ;;  %v3840_v59 = vld [vmem:[%s4179_s20 + $0x168] sm:$0xff] }
 0x5b9   : > { %3979 = vrsqrt.f32 %v1111_v6  ;;  %vm1118_vm8 = vweird.f32 %v1111_v6  ;;  %v3856_v60 = vld [vmem:[%s4179_s20 + $0x1e8] sm:$0xff] }
 0x5bf   : > { %v3980_v20 = vpop.eup %3979 }
 0x5c0   : > { %v1113_v21 = vmul.f32 %v3980_v20, %v1111_v6  ;;  %vm1119_vm7 = vweird.f32 %v3980_v20  ;;  %v3224_v6 = vor.u32 %v3786_v63, %v3221_v0  ;;  %v3839_v63 = vld [vmem:[%s4179_s20 + $0x160] sm:$0xff] }
 0x5c1   : > { %vm1120_vm9 = vmor %vm1118_vm8, %vm1119_vm7  ;;  %v3855_v0 = vld [vmem:[%s4179_s20 + $0x1e0] sm:$0xff] }
 0x5c2   : > { %v1114_v22 = vmul.f32 %v3980_v20, %v1113_v21  ;;  %v3818_v21 = vld [vmem:[%s4179_s20 + $0xb8] sm:$0xff] }
 0x5c4   : > { %v1115_v23 = vmul.f32 0.5, %v1114_v22  ;;  %v3809_v22 = vld [vmem:[%s4179_s20 + $0x70] sm:$0xff] }
 0x5c6   : > { %v1116_v24 = vsub.f32 1.5, %v1115_v23  ;;  %v3825_v23 = vld [vmem:[%s4179_s20 + $0xf0] sm:$0xff] }
 0x5c8   : > { %v1117_v25 = vmul.f32 %v3980_v20, %v1116_v24  ;;  %v3801_v24 = vld [vmem:[%s4179_s20 + $0x30] sm:$0xff] }
 0x5ca   : > { %v1121_v10 = vsel %vm1120_vm9, %v3980_v20, %v1117_v25  ;;  %v3802_v20 = vld [vmem:[%s4179_s20 + $0x38] sm:$0xff]  ;;  %v3817_v25 = vld [vmem:[%s4179_s20 + $0xb0] sm:$0xff] }
 0x5cb   : > { %v1122_v30 = vmul.f32 %v1121_v10, %v4274_v29  ;;  %v3824_v10 = vld [vmem:[%s4179_s20 + $0xe8] sm:$0xff] }
 0x5cd   : > { %v1126_v31 = vmul.f32 %v3956_v26, %v1122_v30  ;;  %v3808_v26 = vld [vmem:[%s4179_s20 + $0x68] sm:$0xff] }
 0x5ce   : > { %v3816_v30 = vld [vmem:[%s4179_s20 + $0xa8] sm:$0xff] }
 0x5cf   : > { %v4328_v37 = vadd.f32 %v3957_v28, %v1126_v31  ;;  %v3800_v28 = vld [vmem:[%s4179_s20 + $0x28] sm:$0xff]  ;;  %v3807_v31 = vld [vmem:[%s4179_s20 + $0x60] sm:$0xff] }
 0x5d1   : > { %v4335_v29 = vpack.c.bf16 %v4328_v37, %v4328_v37 }
 0x5d3   : > { %3225 = vmatmul.msk.bf16.vlgmr.msra.gmra.mxu3 %vm753_vm2, %v4335_v29  ;;  %3226 = vmatmul.msk.bf16.vlgmr.msra.gmra.mxu0 %vm753_vm2, %v4335_v29 }
 0x5d4   : > { %3227 = vmatmul.msk.bf16.vlgmr.msrb.gmra.mxu2 %vm753_vm2, %v4335_v29  ;;  %3228 = vmatmul.msk.bf16.vlgmr.msrb.gmra.mxu1 %vm753_vm2, %v4335_v29 }
 0x5d5   : > { %1473 = vmatpush.bf16.msra.mxu3 %v3196_v41  ;;  %1486 = vmatpush.bf16.msra.mxu0 %v3200_v42  ;;  %v3821_v41 = vld [vmem:[%s4179_s20 + $0xd0] sm:$0xff] }
 0x5d6   : > { %1499 = vmatpush.bf16.msrb.mxu2 %v3204_v45  ;;  %1512 = vmatpush.bf16.msrb.mxu1 %v3208_v46  ;;  %v3797_v42 = vld [vmem:[%s4179_s20 + $0x10] sm:$0xff]  ;;  %v3796_v45 = vld [vmem:[%s4179_s20 + $0x8] sm:$0xff] }
 0x5d7   : > { %v3812_v46 = vld [vmem:[%s4179_s20 + $0x88] sm:$0xff] }
 0x5d9   : > { %1474 = vmatpush.bf16.msra.mxu3 %v3132_v53  ;;  %1487 = vmatpush.bf16.msra.mxu0 %v3136_v54  ;;  %v3834_v53 = vld [vmem:[%s4179_s20 + $0x138] sm:$0xff] }
 0x5da   : > { %1500 = vmatpush.bf16.msrb.mxu2 %v3140_v55  ;;  %1513 = vmatpush.bf16.msrb.mxu1 %v3144_v56  ;;  %v3850_v54 = vld [vmem:[%s4179_s20 + $0x1b8] sm:$0xff]  ;;  %v3841_v55 = vld [vmem:[%s4179_s20 + $0x170] sm:$0xff] }
 0x5db   : > { %v3857_v56 = vld [vmem:[%s4179_s20 + $0x1f0] sm:$0xff] }
 0x5e3   : > { %3229 = vmatmul.msk.bf16.vlgmr.msrb.gmra.mxu3 %vm753_vm2, %v4335_v29  ;;  %3230 = vmatmul.msk.bf16.vlgmr.msrb.gmra.mxu0 %vm753_vm2, %v4335_v29 }
 0x5e4   : > { %3231 = vmatmul.msk.bf16.vlgmr.msra.gmra.mxu2 %vm753_vm2, %v4335_v29  ;;  %3232 = vmatmul.msk.bf16.vlgmr.msra.gmra.mxu1 %vm753_vm2, %v4335_v29 }
 0x5e5   : > { %1525 = vmatpush.bf16.msrb.mxu3 %v3212_v1  ;;  %1538 = vmatpush.bf16.msrb.mxu0 %v3216_v2  ;;  %v3831_v1 = vld [vmem:[%s4179_s20 + $0x120] sm:$0xff] }
 0x5e6   : > { %1551 = vmatpush.bf16.msra.mxu2 %v3220_v5  ;;  %1564 = vmatpush.bf16.msra.mxu1 %v3224_v6  ;;  %v3847_v2 = vld [vmem:[%s4179_s20 + $0x1a0] sm:$0xff]  ;;  %v3837_v5 = vld [vmem:[%s4179_s20 + $0x150] sm:$0xff] }
 0x5e7   : > { %v3853_v6 = vld [vmem:[%s4179_s20 + $0x1d0] sm:$0xff] }
 0x5e9   : > { %1526 = vmatpush.bf16.msrb.mxu3 %v3148_v14  ;;  %1539 = vmatpush.bf16.msrb.mxu0 %v3152_v15  ;;  %v3835_v14 = vld [vmem:[%s4179_s20 + $0x140] sm:$0xff] }
 0x5ea   : > { %1552 = vmatpush.bf16.msra.mxu2 %v3156_v16  ;;  %1565 = vmatpush.bf16.msra.mxu1 %v3160_v17  ;;  %v3851_v15 = vld [vmem:[%s4179_s20 + $0x1c0] sm:$0xff]  ;;  %v3828_v16 = vld [vmem:[%s4179_s20 + $0x108] sm:$0xff] }
 0x5eb   : > { %v3844_v17 = vld [vmem:[%s4179_s20 + $0x188] sm:$0xff] }
 0x5f3   : > { %3233 = vmatmul.msk.bf16.vlgmr.msra.gmra.mxu3 %vm753_vm2, %v4335_v29  ;;  %3234 = vmatmul.msk.bf16.vlgmr.msra.gmra.mxu0 %vm753_vm2, %v4335_v29 }
 0x5f4   : > { %3235 = vmatmul.msk.bf16.vlgmr.msrb.gmra.mxu2 %vm753_vm2, %v4335_v29  ;;  %3236 = vmatmul.msk.bf16.vlgmr.msrb.gmra.mxu1 %vm753_vm2, %v4335_v29 }
 0x5f5   : > { %2644 = vmatpush.bf16.msra.mxu0 %v3810_v18  ;;  %2670 = vmatpush.bf16.msrb.mxu1 %v3826_v19  ;;  %v3827_v18 = vld [vmem:[%s4179_s20 + $0x100] sm:$0xff] }
 0x5f6   : > { %2631 = vmatpush.bf16.msra.mxu3 %v3802_v20  ;;  %2657 = vmatpush.bf16.msrb.mxu2 %v3818_v21  ;;  %v3843_v19 = vld [vmem:[%s4179_s20 + $0x180] sm:$0xff] }
 0x5f7   : > { %v4458_v20 = vld [vmem:[%s4629_s28] sm:$0xff] }
 0x5f8   : > { %v1169_v21 = vperm.slane %v4458_v20, 1 }
 0x5f9   : > { %2645 = vmatpush.bf16.msra.mxu0 %v3809_v22  ;;  %2671 = vmatpush.bf16.msrb.mxu1 %v3825_v23  ;;  %v1171_v22 = vperm.slane %v4458_v20, 3 }
 0x5fa   : > { %2632 = vmatpush.bf16.msra.mxu3 %v3801_v24  ;;  %2658 = vmatpush.bf16.msrb.mxu2 %v3817_v25 }
 0x5fd   : > { %2646 = vmatpush.bf16.msra.mxu0 %v3808_v26  ;;  %2672 = vmatpush.bf16.msrb.mxu1 %v3824_v10 }
 0x5fe   : > { %2633 = vmatpush.bf16.msra.mxu3 %v3800_v28  ;;  %2659 = vmatpush.bf16.msrb.mxu2 %v3816_v30  ;;  %v1168_v28 = vperm.slane %v4458_v20, 0 }
 0x601   : > { %2647 = vmatpush.bf16.msra.mxu0 %v3807_v31  ;;  %2673 = vmatpush.bf16.msrb.mxu1 %v3823_v32  ;;  %v1170_v31 = vperm.slane %v4458_v20, 2  ;;  %v3874_v32 = vld [vmem:[%s4179_s20 + $0x278] sm:$0xff] }
 0x602   : > { %2634 = vmatpush.bf16.msra.mxu3 %v3799_v33  ;;  %2660 = vmatpush.bf16.msrb.mxu2 %v3815_v34  ;;  %v3890_v34 = vld [vmem:[%s4179_s20 + $0x2f8] sm:$0xff] }
 0x603   : > { %3237 = vmatmul.msk.bf16.vlgmr.msrb.gmra.mxu3 %vm753_vm2, %v4335_v29  ;;  %3238 = vmatmul.msk.bf16.vlgmr.msrb.gmra.mxu0 %vm753_vm2, %v4335_v29 }
 0x604   : > { %3239 = vmatmul.msk.bf16.vlgmr.msra.gmra.mxu2 %vm753_vm2, %v4335_v29  ;;  %3240 = vmatmul.msk.bf16.vlgmr.msra.gmra.mxu1 %vm753_vm2, %v4335_v29  ;;  %v3820_v29 = vld [vmem:[%s4179_s20 + $0xc8] sm:$0xff] }
 0x605   : > { %2648 = vmatpush.bf16.msra.mxu0 %v3806_v35  ;;  %2674 = vmatpush.bf16.msrb.mxu1 %v3822_v36 }
 0x606   : > { %2635 = vmatpush.bf16.msra.mxu3 %v3798_v38  ;;  %2661 = vmatpush.bf16.msrb.mxu2 %v3814_v39 }
 0x609   : > { %2649 = vmatpush.bf16.msra.mxu0 %v3805_v40  ;;  %2675 = vmatpush.bf16.msrb.mxu1 %v3821_v41 }
 0x60a   : > { %2636 = vmatpush.bf16.msra.mxu3 %v3797_v42  ;;  %2662 = vmatpush.bf16.msrb.mxu2 %v3813_v43  ;;  %v3873_v42 = vld [vmem:[%s4179_s20 + $0x270] sm:$0xff] }
 0x60d   : > { %2650 = vmatpush.bf16.msra.mxu0 %v3804_v44  ;;  %2676 = vmatpush.bf16.msrb.mxu1 %v3820_v29  ;;  %v3889_v29 = vld [vmem:[%s4179_s20 + $0x2f0] sm:$0xff] }
 0x60e   : > { %2637 = vmatpush.bf16.msra.mxu3 %v3796_v45  ;;  %2663 = vmatpush.bf16.msrb.mxu2 %v3812_v46  ;;  %v3866_v46 = vld [vmem:[%s4179_s20 + $0x238] sm:$0xff] }
 0x611   : > { %2651 = vmatpush.bf16.msra.mxu0 %v3803_v47  ;;  %2677 = vmatpush.bf16.msrb.mxu1 %v3819_v48  ;;  %v3882_v48 = vld [vmem:[%s4179_s20 + $0x2b8] sm:$0xff] }
 0x612   : > { %2638 = vmatpush.bf16.msra.mxu3 %v3795_v51  ;;  %2664 = vmatpush.bf16.msrb.mxu2 %v3811_v52  ;;  %v3888_v51 = vld [vmem:[%s4179_s20 + $0x2e8] sm:$0xff]  ;;  %v1173_v52 = vperm.slane %v4458_v20, 5 }
 0x615   : > { %2696 = vmatpush.bf16.msrb.mxu0 %v3842_v49  ;;  %2722 = vmatpush.bf16.msra.mxu1 %v3858_v50  ;;  %v3872_v50 = vld [vmem:[%s4179_s20 + $0x268] sm:$0xff] }
 0x616   : > { %2683 = vmatpush.bf16.msrb.mxu3 %v3834_v53  ;;  %2709 = vmatpush.bf16.msra.mxu2 %v3850_v54  ;;  %v1175_v54 = vperm.slane %v4458_v20, 7 }
 0x619   : > { %2697 = vmatpush.bf16.msrb.mxu0 %v3841_v55  ;;  %2723 = vmatpush.bf16.msra.mxu1 %v3857_v56  ;;  %v3865_v55 = vld [vmem:[%s4179_s20 + $0x230] sm:$0xff] }
 0x61a   : > { %2684 = vmatpush.bf16.msrb.mxu3 %v3833_v57  ;;  %2710 = vmatpush.bf16.msra.mxu2 %v3849_v58  ;;  %v3881_v57 = vld [vmem:[%s4179_s20 + $0x2b0] sm:$0xff] }
 0x61d   : > { %2698 = vmatpush.bf16.msrb.mxu0 %v3840_v59  ;;  %2724 = vmatpush.bf16.msra.mxu1 %v3856_v60  ;;  %v3871_v59 = vld [vmem:[%s4179_s20 + $0x260] sm:$0xff] }
 0x61e   : > { %2685 = vmatpush.bf16.msrb.mxu3 %v3832_v61  ;;  %2711 = vmatpush.bf16.msra.mxu2 %v3848_v62  ;;  %v3887_v62 = vld [vmem:[%s4179_s20 + $0x2e0] sm:$0xff] }
 0x621   : > { %2699 = vmatpush.bf16.msrb.mxu0 %v3839_v63  ;;  %2725 = vmatpush.bf16.msra.mxu1 %v3855_v0  ;;  %v3864_v0 = vld [vmem:[%s4179_s20 + $0x228] sm:$0xff] }
 0x622   : > { %2686 = vmatpush.bf16.msrb.mxu3 %v3831_v1  ;;  %2712 = vmatpush.bf16.msra.mxu2 %v3847_v2  ;;  %v3880_v2 = vld [vmem:[%s4179_s20 + $0x2a8] sm:$0xff] }
 0x625   : > { %2700 = vmatpush.bf16.msrb.mxu0 %v3838_v3  ;;  %2726 = vmatpush.bf16.msra.mxu1 %v3854_v4  ;;  %v1172_v3 = vperm.slane %v4458_v20, 4 }
 0x626   : > { %2687 = vmatpush.bf16.msrb.mxu3 %v3830_v7  ;;  %2713 = vmatpush.bf16.msra.mxu2 %v3846_v8  ;;  %v3886_v8 = vld [vmem:[%s4179_s20 + $0x2d8] sm:$0xff] }
 0x629   : > { %2701 = vmatpush.bf16.msrb.mxu0 %v3837_v5  ;;  %2727 = vmatpush.bf16.msra.mxu1 %v3853_v6  ;;  %v1174_v5 = vperm.slane %v4458_v20, 6  ;;  %v3870_v6 = vld [vmem:[%s4179_s20 + $0x258] sm:$0xff] }
 0x62a   : > { %2688 = vmatpush.bf16.msrb.mxu3 %v3829_v12  ;;  %2714 = vmatpush.bf16.msra.mxu2 %v3845_v13  ;;  %v3863_v12 = vld [vmem:[%s4179_s20 + $0x220] sm:$0xff] }
 0x62d   : > { %2702 = vmatpush.bf16.msrb.mxu0 %v3836_v9  ;;  %2728 = vmatpush.bf16.msra.mxu1 %v3852_v11 }
 0x62e   : > { %2689 = vmatpush.bf16.msrb.mxu3 %v3828_v16  ;;  %2715 = vmatpush.bf16.msra.mxu2 %v3844_v17 }
 0x631   : > { %2703 = vmatpush.bf16.msrb.mxu0 %v3835_v14  ;;  %2729 = vmatpush.bf16.msra.mxu1 %v3851_v15  ;;  %v3879_v15 = vld [vmem:[%s4179_s20 + $0x2a0] sm:$0xff] }
 0x632   : > { %2690 = vmatpush.bf16.msrb.mxu3 %v3827_v18  ;;  %2716 = vmatpush.bf16.msra.mxu2 %v3843_v19  ;;  %v3869_v18 = vld [vmem:[%s4179_s20 + $0x250] sm:$0xff] }
 0x650   : > { %v1385_v23 = vpop.f32.mrf.mxu0 }
 0x651   : > { %v1386_v24 = vadd.f32 %v1385_v23, %v1169_v21  ;;  %v1411_v25 = vpop.f32.mrf.mxu1  ;;  %v3885_v21 = vld [vmem:[%s4179_s20 + $0x2d0] sm:$0xff]  ;;  %v3862_v23 = vld [vmem:[%s4179_s20 + $0x218] sm:$0xff] }
 0x652   : > { %v1412_v26 = vadd.f32 %v1411_v25, %v1171_v22 }
 0x653   : > { %v1572_v10 = vmax.f32 %v1386_v24, 0.0  ;;  %v4490_v24 = vld [vmem:[%s4629_s28 + $0x8] sm:$0xff] }
 0x654   : > { %v1574_v30 = vmax.f32 %v1412_v26, 0.0  ;;  %v3878_v26 = vld [vmem:[%s4179_s20 + $0x298] sm:$0xff] }
 0x655   : > { %v1588_v33 = vpack.c.bf16 %v1572_v10, %v1572_v10 }
 0x656   : > { %v1590_v35 = vpack.c.bf16 %v1574_v30, %v1574_v30  ;;  %v1372_v36 = vpop.f32.mrf.mxu3  ;;  %v3884_v30 = vld [vmem:[%s4179_s20 + $0x2c8] sm:$0xff] }
 0x657   : > { %v1373_v38 = vadd.f32 %v1372_v36, %v1168_v28  ;;  %v1398_v39 = vpop.f32.mrf.mxu2  ;;  %2652 = vmatmul.bf16.vlgmr.msra.gmra.mxu0 %v1588_v33  ;;  %v3868_v28 = vld [vmem:[%s4179_s20 + $0x248] sm:$0xff]  ;;  %v1179_v33 = vperm.slane %v4490_v24, 3  ;;  %v3877_v36 = vld [vmem:[%s4179_s20 + $0x290] sm:$0xff] }
 0x658   : > { %v1399_v40 = vadd.f32 %v1398_v39, %v1170_v31  ;;  %2678 = vmatmul.bf16.vlgmr.msrb.gmra.mxu1 %v1590_v35  ;;  %2748 = vmatpush.bf16.msra.mxu0 %v3874_v32  ;;  %v1387_v41 = vpop.f32.mrf.mxu0  ;;  %v1177_v31 = vperm.slane %v4490_v24, 1  ;;  %v3867_v39 = vld [vmem:[%s4179_s20 + $0x240] sm:$0xff] }
 0x659   : > { %v1571_v43 = vmax.f32 %v1373_v38, 0.0  ;;  %2774 = vmatpush.bf16.msrb.mxu1 %v3890_v34  ;;  %v1413_v44 = vpop.f32.mrf.mxu1  ;;  %v3861_v34 = vld [vmem:[%s4179_s20 + $0x210] sm:$0xff] }
 0x65a   : > { %v1573_v45 = vmax.f32 %v1399_v40, 0.0 }
 0x65b   : > { %v1587_v47 = vpack.c.bf16 %v1571_v43, %v1571_v43  ;;  %v3906_v43 = vld [vmem:[%s4179_s20 + $0x378] sm:$0xff] }
 0x65c   : > { %v1589_v49 = vpack.c.bf16 %v1573_v45, %v1573_v45  ;;  %2749 = vmatpush.bf16.msra.mxu0 %v3873_v42  ;;  %v3883_v42 = vld [vmem:[%s4179_s20 + $0x2c0] sm:$0xff]  ;;  %v3860_v45 = vld [vmem:[%s4179_s20 + $0x208] sm:$0xff] }
 0x65d   : > { %2775 = vmatpush.bf16.msrb.mxu1 %v3889_v29  ;;  %2639 = vmatmul.bf16.vlgmr.msra.gmra.mxu3 %v1587_v47  ;;  %v3922_v29 = vld [vmem:[%s4179_s20 + $0x3f8] sm:$0xff]  ;;  %v3876_v47 = vld [vmem:[%s4179_s20 + $0x288] sm:$0xff] }
 0x65e   : > { %2665 = vmatmul.bf16.vlgmr.msrb.gmra.mxu2 %v1589_v49  ;;  %2735 = vmatpush.bf16.msra.mxu3 %v3866_v46  ;;  %v1374_v53 = vpop.f32.mrf.mxu3 }
 0x65f   : > { %2761 = vmatpush.bf16.msrb.mxu2 %v3882_v48  ;;  %v1400_v56 = vpop.f32.mrf.mxu2  ;;  %v1176_v48 = vperm.slane %v4490_v24, 0 }
 0x660   : > { %2750 = vmatpush.bf16.msra.mxu0 %v3872_v50  ;;  %v1437_v58 = vpop.f32.mrf.mxu0  ;;  %v1178_v50 = vperm.slane %v4490_v24, 2  ;;  %v3859_v56 = vld [vmem:[%s4179_s20 + $0x200] sm:$0xff] }
 0x661   : > { %2776 = vmatpush.bf16.msrb.mxu1 %v3888_v51  ;;  %v1438_v60 = vadd.f32 %v1437_v58, %v1173_v52  ;;  %v1463_v61 = vpop.f32.mrf.mxu1  ;;  %v3905_v52 = vld [vmem:[%s4179_s20 + $0x370] sm:$0xff] }
 0x662   : > { %v1464_v63 = vadd.f32 %v1463_v61, %v1175_v54  ;;  %2736 = vmatpush.bf16.msra.mxu3 %v3865_v55  ;;  %v3921_v55 = vld [vmem:[%s4179_s20 + $0x3f0] sm:$0xff] }
 0x663   : > { %v1576_v1 = vmax.f32 %v1438_v60, 0.0  ;;  %2762 = vmatpush.bf16.msrb.mxu2 %v3881_v57  ;;  %v3898_v60 = vld [vmem:[%s4179_s20 + $0x338] sm:$0xff] }
 0x664   : > { %v1578_v4 = vmax.f32 %v1464_v63, 0.0  ;;  %2751 = vmatpush.bf16.msra.mxu0 %v3871_v59  ;;  %v3875_v59 = vld [vmem:[%s4179_s20 + $0x280] sm:$0xff]  ;;  %v3914_v63 = vld [vmem:[%s4179_s20 + $0x3b8] sm:$0xff] }
 0x665   : > { %v1592_v7 = vpack.c.bf16 %v1576_v1, %v1576_v1  ;;  %2777 = vmatpush.bf16.msrb.mxu1 %v3887_v62 }
 0x666   : > { %v1594_v9 = vpack.c.bf16 %v1578_v4, %v1578_v4  ;;  %2737 = vmatpush.bf16.msra.mxu3 %v3864_v0  ;;  %v1424_v11 = vpop.f32.mrf.mxu3  ;;  %v3920_v4 = vld [vmem:[%s4179_s20 + $0x3e8] sm:$0xff] }
 0x667   : > { %2763 = vmatpush.bf16.msrb.mxu2 %v3880_v2  ;;  %v1425_v13 = vadd.f32 %v1424_v11, %v1172_v3  ;;  %v1450_v14 = vpop.f32.mrf.mxu2  ;;  %2704 = vmatmul.bf16.vlgmr.msrb.gmra.mxu0 %v1592_v7  ;;  %v3904_v2 = vld [vmem:[%s4179_s20 + $0x368] sm:$0xff] }
 0x668   : > { %v1451_v16 = vadd.f32 %v1450_v14, %v1174_v5  ;;  %2730 = vmatmul.bf16.vlgmr.msra.gmra.mxu1 %v1594_v9  ;;  %2752 = vmatpush.bf16.msra.mxu0 %v3870_v6  ;;  %v1439_v17 = vpop.f32.mrf.mxu0  ;;  %v3897_v6 = vld [vmem:[%s4179_s20 + $0x330] sm:$0xff]  ;;  %v3903_v9 = vld [vmem:[%s4179_s20 + $0x360] sm:$0xff]  ;;  %v3896_v14 = vld [vmem:[%s4179_s20 + $0x328] sm:$0xff] }
 0x669   : > { %v1575_v19 = vmax.f32 %v1425_v13, 0.0  ;;  %2778 = vmatpush.bf16.msrb.mxu1 %v3886_v8  ;;  %v1465_v20 = vpop.f32.mrf.mxu1  ;;  %v3913_v8 = vld [vmem:[%s4179_s20 + $0x3b0] sm:$0xff] }
 0x66a   : > { %v1577_v22 = vmax.f32 %v1451_v16, 0.0  ;;  %2738 = vmatpush.bf16.msra.mxu3 %v3863_v12  ;;  %v3919_v12 = vld [vmem:[%s4179_s20 + $0x3e0] sm:$0xff]  ;;  %v3912_v16 = vld [vmem:[%s4179_s20 + $0x3a8] sm:$0xff] }
 0x66b   : > { %v1591_v25 = vpack.c.bf16 %v1575_v19, %v1575_v19  ;;  %2764 = vmatpush.bf16.msrb.mxu2 %v3879_v15  ;;  %v3918_v19 = vld [vmem:[%s4179_s20 + $0x3d8] sm:$0xff]  ;;  %v3895_v20 = vld [vmem:[%s4179_s20 + $0x320] sm:$0xff] }
 0x66c   : > { %v1593_v10 = vpack.c.bf16 %v1577_v22, %v1577_v22  ;;  %2753 = vmatpush.bf16.msra.mxu0 %v3869_v18  ;;  %v3902_v18 = vld [vmem:[%s4179_s20 + $0x358] sm:$0xff]  ;;  %v3901_v22 = vld [vmem:[%s4179_s20 + $0x350] sm:$0xff] }
 0x66d   : > { %2779 = vmatpush.bf16.msrb.mxu1 %v3885_v21  ;;  %2691 = vmatmul.bf16.vlgmr.msrb.gmra.mxu3 %v1591_v25  ;;  %v3911_v21 = vld [vmem:[%s4179_s20 + $0x3a0] sm:$0xff] }
 0x66e   : > { %2717 = vmatmul.bf16.vlgmr.msra.gmra.mxu2 %v1593_v10  ;;  %2739 = vmatpush.bf16.msra.mxu3 %v3862_v23  ;;  %v1426_v32 = vpop.f32.mrf.mxu3  ;;  %v1181_v23 = vperm.slane %v4490_v24, 5  ;;  %v1183_v10 = vperm.slane %v4490_v24, 7 }
 0x66f   : > { %2765 = vmatpush.bf16.msrb.mxu2 %v3878_v26  ;;  %v1452_v35 = vpop.f32.mrf.mxu2  ;;  %v3917_v26 = vld [vmem:[%s4179_s20 + $0x3d0] sm:$0xff]  ;;  %v3910_v32 = vld [vmem:[%s4179_s20 + $0x398] sm:$0xff] }
 0x670   : > { %2754 = vmatpush.bf16.msra.mxu0 %v3868_v28  ;;  %v1489_v38 = vpop.f32.mrf.mxu0 }
 0x671   : > { %2780 = vmatpush.bf16.msrb.mxu1 %v3884_v30  ;;  %v1490_v40 = vadd.f32 %v1489_v38, %v1177_v31  ;;  %v1515_v41 = vpop.f32.mrf.mxu1  ;;  %v3894_v30 = vld [vmem:[%s4179_s20 + $0x318] sm:$0xff] }
 0x672   : > { %v1516_v44 = vadd.f32 %v1515_v41, %v1179_v33  ;;  %2740 = vmatpush.bf16.msra.mxu3 %v3861_v34  ;;  %v3900_v34 = vld [vmem:[%s4179_s20 + $0x348] sm:$0xff]  ;;  %v3909_v41 = vld [vmem:[%s4179_s20 + $0x390] sm:$0xff] }
 0x673   : > { %v1580_v46 = vmax.f32 %v1490_v40, 0.0  ;;  %2766 = vmatpush.bf16.msrb.mxu2 %v3877_v36  ;;  %v3916_v36 = vld [vmem:[%s4179_s20 + $0x3c8] sm:$0xff]  ;;  %v1180_v40 = vperm.slane %v4490_v24, 4 }
 0x674   : > { %v1582_v49 = vmax.f32 %v1516_v44, 0.0  ;;  %2755 = vmatpush.bf16.msra.mxu0 %v3867_v39  ;;  %v3893_v39 = vld [vmem:[%s4179_s20 + $0x310] sm:$0xff] }
 0x675   : > { %v1596_v51 = vpack.c.bf16 %v1580_v46, %v1580_v46  ;;  %2781 = vmatpush.bf16.msrb.mxu1 %v3883_v42  ;;  %v1182_v42 = vperm.slane %v4490_v24, 6 }
 0x676   : > { %v1598_v53 = vpack.c.bf16 %v1582_v49, %v1582_v49  ;;  %2741 = vmatpush.bf16.msra.mxu3 %v3860_v45  ;;  %v1476_v54 = vpop.f32.mrf.mxu3  ;;  %v3915_v45 = vld [vmem:[%s4179_s20 + $0x3c0] sm:$0xff] }
 0x677   : > { %2767 = vmatpush.bf16.msrb.mxu2 %v3876_v47  ;;  %v1477_v57 = vadd.f32 %v1476_v54, %v1176_v48  ;;  %v1502_v58 = vpop.f32.mrf.mxu2  ;;  %2756 = vmatmul.bf16.vlgmr.msra.gmra.mxu0 %v1596_v51  ;;  %v3892_v48 = vld [vmem:[%s4179_s20 + $0x308] sm:$0xff] }
 0x678   : > { %2800 = vmatpush.bf16.msrb.mxu0 %v3906_v43  ;;  %v1503_v61 = vadd.f32 %v1502_v58, %v1178_v50  ;;  %2782 = vmatmul.bf16.vlgmr.msrb.gmra.mxu1 %v1598_v53  ;;  %v1491_v62 = vpop.f32.mrf.mxu0  ;;  %v3899_v43 = vld [vmem:[%s4179_s20 + $0x340] sm:$0xff]  ;;  %v3908_v50 = vld [vmem:[%s4179_s20 + $0x388] sm:$0xff] }
 0x679   : > { %2826 = vmatpush.bf16.msra.mxu1 %v3922_v29  ;;  %v1579_v0 = vmax.f32 %v1477_v57, 0.0  ;;  %v1517_v1 = vpop.f32.mrf.mxu1  ;;  %v3891_v53 = vld [vmem:[%s4179_s20 + $0x300] sm:$0xff] }
 0x67a   : > { %v1581_v3 = vmax.f32 %v1503_v61, 0.0  ;;  %2742 = vmatpush.bf16.msra.mxu3 %v3859_v56 }
 0x67b   : > { %v1595_v5 = vpack.c.bf16 %v1579_v0, %v1579_v0  ;;  %2768 = vmatpush.bf16.msrb.mxu2 %v3875_v59 }
 0x67c   : > { %2801 = vmatpush.bf16.msrb.mxu0 %v3905_v52  ;;  %v1597_v7 = vpack.c.bf16 %v1581_v3, %v1581_v3 }
 0x67d   : > { %2827 = vmatpush.bf16.msra.mxu1 %v3921_v55  ;;  %2743 = vmatmul.bf16.vlgmr.msra.gmra.mxu3 %v1595_v5  ;;  %v3907_v55 = vld [vmem:[%s4179_s20 + $0x380] sm:$0xff] }
 0x67e   : > { %2787 = vmatpush.bf16.msrb.mxu3 %v3898_v60  ;;  %2769 = vmatmul.bf16.vlgmr.msrb.gmra.mxu2 %v1597_v7  ;;  %v1478_v11 = vpop.f32.mrf.mxu3  ;;  %v3958_v7 = vld [vmem:[%s697_s24] ss:$0 sm:$0xff] }
 0x67f   : > { %2813 = vmatpush.bf16.msra.mxu2 %v3914_v63  ;;  %v1504_v13 = vpop.f32.mrf.mxu2 }
 0x680   : > { %2802 = vmatpush.bf16.msrb.mxu0 %v3904_v2  ;;  %v1541_v15 = vpop.f32.mrf.mxu0 }
 0x681   : > { %2828 = vmatpush.bf16.msra.mxu1 %v3920_v4  ;;  %v1567_v17 = vpop.f32.mrf.mxu1  ;;  %v1542_v35 = vadd.f32 %v1541_v15, %v1181_v23 }
 0x682   : > { %2788 = vmatpush.bf16.msrb.mxu3 %v3897_v6  ;;  %v1568_v38 = vadd.f32 %v1567_v17, %v1183_v10 }
 0x683   : > { %2814 = vmatpush.bf16.msra.mxu2 %v3913_v8  ;;  %v1584_v44 = vmax.f32 %v1542_v35, 0.0 }
 0x684   : > { %2803 = vmatpush.bf16.msrb.mxu0 %v3903_v9  ;;  %v1586_v46 = vmax.f32 %v1568_v38, 0.0 }
 0x685   : > { %2829 = vmatpush.bf16.msra.mxu1 %v3919_v12  ;;  %v1600_v52 = vpack.c.bf16 %v1584_v44, %v1584_v44 }
 0x686   : > { %2789 = vmatpush.bf16.msrb.mxu3 %v3896_v14  ;;  %v1528_v25 = vpop.f32.mrf.mxu3  ;;  %v1602_v24 = vpack.c.bf16 %v1586_v46, %v1586_v46 }
 0x687   : > { %2815 = vmatpush.bf16.msra.mxu2 %v3912_v16  ;;  %v1554_v28 = vpop.f32.mrf.mxu2  ;;  %v1529_v49 = vadd.f32 %v1528_v25, %v1180_v40 }
 0x688   : > { %2804 = vmatpush.bf16.msrb.mxu0 %v3902_v18  ;;  %v1543_v31 = vpop.f32.mrf.mxu0  ;;  %v1555_v51 = vadd.f32 %v1554_v28, %v1182_v42 }
 0x689   : > { %2830 = vmatpush.bf16.msra.mxu1 %v3918_v19  ;;  %v1569_v33 = vpop.f32.mrf.mxu1  ;;  %v1583_v54 = vmax.f32 %v1529_v49, 0.0 }
 0x68a   : > { %2790 = vmatpush.bf16.msrb.mxu3 %v3895_v20  ;;  %v1585_v56 = vmax.f32 %v1555_v51, 0.0 }
 0x68b   : > { %2816 = vmatpush.bf16.msra.mxu2 %v3911_v21  ;;  %v1599_v57 = vpack.c.bf16 %v1583_v54, %v1583_v54 }
 0x68c   : > { %2805 = vmatpush.bf16.msrb.mxu0 %v3901_v22  ;;  %v1601_v58 = vpack.c.bf16 %v1585_v56, %v1585_v56 }
 0x68d   : > { %2831 = vmatpush.bf16.msra.mxu1 %v3917_v26 }
 0x68e   : > { %2791 = vmatpush.bf16.msrb.mxu3 %v3894_v30  ;;  %v1530_v29 = vpop.f32.mrf.mxu3 }
 0x68f   : > { %2817 = vmatpush.bf16.msra.mxu2 %v3910_v32  ;;  %v1556_v47 = vpop.f32.mrf.mxu2 }
 0x690   : > { %2806 = vmatpush.bf16.msrb.mxu0 %v3900_v34 }
 0x691   : > { %2832 = vmatpush.bf16.msra.mxu1 %v3916_v36 }
 0x692   : > { %2792 = vmatpush.bf16.msrb.mxu3 %v3893_v39 }
 0x693   : > { %2818 = vmatpush.bf16.msra.mxu2 %v3909_v41 }
 0x694   : > { %2807 = vmatpush.bf16.msrb.mxu0 %v3899_v43 }
 0x695   : > { %2833 = vmatpush.bf16.msra.mxu1 %v3915_v45 }
 0x696   : > { %2793 = vmatpush.bf16.msrb.mxu3 %v3892_v48 }
 0x697   : > { %2819 = vmatpush.bf16.msra.mxu2 %v3908_v50  ;;  %2808 = vmatmul.bf16.vlgmr.msrb.gmra.mxu0 %v1600_v52 }
 0x698   : > { %2834 = vmatmul.bf16.vlgmr.msra.gmra.mxu1 %v1602_v24 }
 0x69a   : > { %2794 = vmatpush.bf16.msrb.mxu3 %v3891_v53 }
 0x69b   : > { %2820 = vmatpush.bf16.msra.mxu2 %v3907_v55 }
 0x69d   : > { %2795 = vmatmul.bf16.vlgmr.msrb.gmra.mxu3 %v1599_v57 }
 0x69e   : > { %2821 = vmatmul.bf16.vlgmr.msra.gmra.mxu2 %v1601_v58 }
 0x6d4   : > { %v2653_v59 = vpop.f32.mrf.mxu0 }
 0x6d5   : > { %v2679_v60 = vpop.f32.mrf.mxu1 }
 0x6dc   : > { %v2655_v61 = vpop.f32.mrf.mxu0 }
 0x6dd   : > { %v2681_v62 = vpop.f32.mrf.mxu1  ;;  %v3959_v61 = vld [vmem:[%s706_s8] ss:$0 sm:$0xff] }
 0x6e0   : > { %v2640_v63 = vpop.f32.mrf.mxu3 }
 0x6e1   : > { %v2666_v0 = vpop.f32.mrf.mxu2  ;;  %v2641_v11 = vadd.f32 %v3958_v7, %v2640_v63 }
 0x6e3   : > { %v2654_v14 = vadd.f32 %v2653_v59, %v2641_v11 }
 0x6e4   : > { %v2705_v1 = vpop.f32.mrf.mxu0 }
 0x6e5   : > { %v2731_v2 = vpop.f32.mrf.mxu1  ;;  %v2667_v17 = vadd.f32 %v2666_v0, %v2654_v14 }
 0x6e7   : > { %v2680_v20 = vadd.f32 %v2679_v60, %v2667_v17 }
 0x6e8   : > { %v2642_v3 = vpop.f32.mrf.mxu3 }
 0x6e9   : > { %v2668_v4 = vpop.f32.mrf.mxu2 }
 0x6ec   : > { %v2707_v5 = vpop.f32.mrf.mxu0 }
 0x6ed   : > { %v2733_v6 = vpop.f32.mrf.mxu1 }
 0x6f0   : > { %v2692_v8 = vpop.f32.mrf.mxu3 }
 0x6f1   : > { %v2718_v9 = vpop.f32.mrf.mxu2  ;;  %v2693_v23 = vadd.f32 %v2692_v8, %v2680_v20 }
 0x6f3   : > { %v2706_v25 = vadd.f32 %v2705_v1, %v2693_v23 }
 0x6f4   : > { %v2757_v12 = vpop.f32.mrf.mxu0 }
 0x6f5   : > { %v2783_v13 = vpop.f32.mrf.mxu1  ;;  %v2719_v28 = vadd.f32 %v2718_v9, %v2706_v25 }
 0x6f7   : > { %v2732_v30 = vadd.f32 %v2731_v2, %v2719_v28 }
 0x6f8   : > { %v2694_v15 = vpop.f32.mrf.mxu3 }
 0x6f9   : > { %v2720_v16 = vpop.f32.mrf.mxu2 }
 0x6fc   : > { %v2759_v18 = vpop.f32.mrf.mxu0 }
 0x6fd   : > { %v2785_v19 = vpop.f32.mrf.mxu1 }
 0x700   : > { %v2744_v21 = vpop.f32.mrf.mxu3 }
 0x701   : > { %v2770_v22 = vpop.f32.mrf.mxu2  ;;  %v2745_v31 = vadd.f32 %v2744_v21, %v2732_v30 }
 0x703   : > { %v2758_v34 = vadd.f32 %v2757_v12, %v2745_v31 }
 0x705   : > { %v2771_v35 = vadd.f32 %v2770_v22, %v2758_v34 }
 0x707   : > { %v2784_v39 = vadd.f32 %v2783_v13, %v2771_v35 }
 0x708   : > { %v2746_v26 = vpop.f32.mrf.mxu3 }
 0x709   : > { %v2772_v10 = vpop.f32.mrf.mxu2 }
 0x714   : > { %v2809_v32 = vpop.f32.mrf.mxu0 }
 0x715   : > { %v2835_v33 = vpop.f32.mrf.mxu1 }
 0x71c   : > { %v2811_v36 = vpop.f32.mrf.mxu0 }
 0x71d   : > { %v2837_v38 = vpop.f32.mrf.mxu1 }
 0x720   : > { %v2796_v40 = vpop.f32.mrf.mxu3 }
 0x721   : > { %v2797_v41 = vadd.f32 %v2796_v40, %v2784_v39  ;;  %v2822_v42 = vpop.f32.mrf.mxu2 }
 0x723   : > { %v2810_v43 = vadd.f32 %v2809_v32, %v2797_v41 }
 0x725   : > { %v2823_v44 = vadd.f32 %v2822_v42, %v2810_v43 }
 0x727   : > { %v2836_v29 = vadd.f32 %v2835_v33, %v2823_v44 }
 0x728   : > { %v2798_v45 = vpop.f32.mrf.mxu3 }
 0x729   : > { %v2824_v46 = vpop.f32.mrf.mxu2  ;;  %v2839_v47 = vadd.f32 %v2836_v29, %v4328_v37 }
 0x72b   : > { %v2842_v48 = vsel %vm753_vm2, %v2839_v47, 0.0 }
 0x72c   : > { %2843 = vadd.xlane.f32.xlu0 %v2842_v48 }
 0x79f   : > { %v2844_v49 = vpop.xlane.xlu0 %2843 }
 0x7a0   : > { %v2845_v50 = vmul.f32 %v2844_v49, %v4271_v27 }
 0x7a2   : > { %v2846_v51 = vsub.f32 %v2839_v47, %v2845_v50 }
 0x7a4   : > { %v2847_v52 = vmul.f32 %v2846_v51, %v2846_v51 }
 0x7a6   : > { %v2848_v24 = vsel %vm753_vm2, %v2847_v52, 0.0 }
 0x7a7   : > { %2849 = vadd.xlane.f32.xlu2 %v2848_v24 }
 0x81a   : > { %v2850_v53 = vpop.xlane.xlu2 %2849 }
 0x81b   : > { %v2851_v54 = vmul.f32 %v2850_v53, %v4271_v27  ;;  %v3960_v27 = vld [vmem:[%s709_s3] ss:$0 sm:$0xff] }
 0x81d   : > { %v2852_v55 = vadd.f32 1e-05, %v2851_v54 }
 0x81f   : > { %3981 = vrsqrt.f32 %v2852_v55  ;;  %vm2859_vm11 = vweird.f32 %v2852_v55 }
 0x825   : > { %v3982_v56 = vpop.eup %3981 }
 0x826   : > { %v2854_v37 = vmul.f32 %v3982_v56, %v2852_v55  ;;  %vm2860_vm10 = vweird.f32 %v3982_v56 }
 0x827   : > { %vm2861_vm12 = vmor %vm2859_vm11, %vm2860_vm10 }
 0x828   : > { %v2855_v57 = vmul.f32 %v3982_v56, %v2854_v37 }
 0x82a   : > { %v2856_v58 = vmul.f32 0.5, %v2855_v57 }
 0x82c   : > { %v2857_v59 = vsub.f32 1.5, %v2856_v58 }
 0x82e   : > { %v2858_v60 = vmul.f32 %v3982_v56, %v2857_v59 }
 0x830   : > { %v2862_v62 = vsel %vm2861_vm12, %v3982_v56, %v2858_v60 }
 0x831   : > { %v2863_v63 = vmul.f32 %v2862_v62, %v2846_v51 }
 0x833   : > { %v2867_v0 = vmul.f32 %v3959_v61, %v2863_v63  ;;  %2876 = sbr.rel (%p3753_p5) target bundleno = 2241 (0x8c1), region = 96 }
 0x835   : > { %v2871_v1 = vadd.f32 %v3960_v27, %v2867_v0 }
 0x837   : > { %2872 = vst.msk [vmem:[#allocation2] sm:$0xff] %vm753_vm2, %v2871_v1 }
 0x838   : > { %v2880_v2 = vld [vmem:[%s4630_s19 + $0x18] sm:$0xff]  ;;  %v2879_v3 = vld [vmem:[%s4630_s19 + $0x10] sm:$0xff]  ;;  %v2878_v4 = vld [vmem:[%s4630_s19 + $0x8] sm:$0xff] }
 0x839   : > { %2900 = vmatpush.msra.mxu0 %v2880_v2  ;;  %v2877_v5 = vld [vmem:[%s4630_s19] sm:$0xff] }
 0x83a   : > { %v3983_v6 = vld [vmem:[%s4631_s30] ss:$0 sm:$0xff] }
 0x83b   : > { %2901 = vmatpush.msra.mxu0 %v2879_v3 }
 0x83d   : > { %2902 = vmatpush.msra.mxu0 %v2878_v4 }
 0x83f   : > { %2903 = vmatpush.msra.mxu0 %v2877_v5 }
 0x840   : > { %3754 = vmatmul.msk.f32.vlgmr.msra.gmra.mxu0 %vm753_vm2, %v2871_v1 }
 0x8bd   : > { %v2905_v7 = vpop.f32.mrf.mxu0 }
 0x8be   : > { %v2906_v8 = vadd.f32 %v3983_v6, %v2905_v7 }
 0x8c0   : > { %2908 = vst [vmem:[#allocation3] sm:$0xff] %v2906_v8 }
 0x8c1 PF: > { %p3927_p6 = scmp.eq.s32.totalorder %s4136_s25, 1  ;;  %s4039_s1 = smov [#allocation3]  }
 0x8c2   : > { %s2915_s28 = sshll.u32 %s4039_s1, 4  ;;  %s4632_s24 = sld [smem:[#allocation16_spill]]  ;;  %s2916_s28 = int_to_ptr.vmem [resolvable:$true] %s2915_s28 }
 0x8c8   : > { %s2917_s0 = sshll.u32 %s4632_s24, 4  ;;  %s2918_s0 = int_to_ptr.hbm [resolvable:$true] %s2917_s0 }
 0x8c9   : > { %3924 = dma.vmem_to_hbm [thread:$0]  (%p3927_p6), %s2916_s28, 128, %s2918_s0, [#allocation4]  }
 0x8ca   : > { %4017 = dma.done.wait (%p3927_p6), [#allocation4], 128  }
 0x8cb   : > { %4019 = vsyncadd (%p3927_p6), [#allocation4], 4294967168 }
 0x8cc PF: > { %s4633_s27 = sld [smem:[#allocation6_spill]] }
 0x8d2   : > { %s28_s24 = sadd.s32 1, %s4633_s27  }
 0x8d3   : > { %p25_p7 = scmp.ge.s32.totalorder %s28_s24, 4  }
 0x8d5   :  { %27 = sbr.rel (!%p25_p7) target bundleno = 11 (0xb), region = 156 }
 0x8da   :  { %2931 = vsyncpa [#allocation4], 1 }
 0x8db   :  { %2933 = vsyncpa [#allocation4 + $0x1], 1 }

</bundles_post_ra>
